<compile_context>
chip_gen: v7x
topology: tpu7x:2x2x1
jax: 0.10.0
libtpu: 0.0.40
codegen_flags: <defaults>
</compile_context>

<pallas_src>
import functools

import jax
import jax.numpy as jnp
from jax.experimental import pallas as pl
from jax.experimental.pallas import tpu as pltpu


# ----------------------------- Pallas kernels ------------------------------

def _attn_block_kernel(x_ref, g1_ref, b1_ref,
                       wq_ref, bq_ref, wk_ref, bk_ref, wv_ref, bv_ref,
                       wo_ref, bo_ref, o_ref, *, nh, scale):
    """x_out = x + out_proj(MHA(LN1(x), causal)); one batch element per step."""
    x = x_ref[0].astype(jnp.float32)                      # (S, W)
    S = x.shape[0]

    # LayerNorm 1 (f32)
    mu = jnp.mean(x, axis=-1, keepdims=True)
    var = jnp.mean((x - mu) ** 2, axis=-1, keepdims=True)
    h = (x - mu) * jax.lax.rsqrt(var + 1e-5) * g1_ref[...] + b1_ref[...]
    h16 = h.astype(jnp.bfloat16)

    # Causal mask (CLIP build_attention_mask), hoisted out of the head loop.
    row = jax.lax.broadcasted_iota(jnp.int32, (S, S), 0)
    col = jax.lax.broadcasted_iota(jnp.int32, (S, S), 1)
    causal = col <= row

    acc = jnp.zeros_like(x)                               # f32 (S, W)
    for hh in range(nh):                                  # static unroll over heads
        q = jnp.dot(h16, wq_ref[hh], preferred_element_type=jnp.float32) + bq_ref[hh]
        k = jnp.dot(h16, wk_ref[hh], preferred_element_type=jnp.float32) + bk_ref[hh]
        v = jnp.dot(h16, wv_ref[hh], preferred_element_type=jnp.float32) + bv_ref[hh]
        # scores: contract last dims directly (no explicit transpose)
        s = jax.lax.dot_general(
            q.astype(jnp.bfloat16), k.astype(jnp.bfloat16),
            (((1,), (1,)), ((), ())),
            preferred_element_type=jnp.float32) * scale   # (S, S)
        s = jnp.where(causal, s, -jnp.inf)
        s_max = jnp.max(s, axis=-1, keepdims=True)
        e = jnp.exp(s - s_max)
        p = e / jnp.sum(e, axis=-1, keepdims=True)
        a = jnp.dot(p.astype(jnp.bfloat16), v.astype(jnp.bfloat16),
                    preferred_element_type=jnp.float32)   # (S, Dh)
        # out_proj split over heads: concat_h(a_h) @ Wout == sum_h a_h @ Wout[h]
        acc = acc + jnp.dot(a.astype(jnp.bfloat16), wo_ref[hh],
                            preferred_element_type=jnp.float32)
    out = x + acc + bo_ref[...]
    o_ref[0] = out.astype(o_ref.dtype)


def _ln_mlp_res_kernel(x_ref, g_ref, b_ref, w1_ref, b1_ref, w2_ref, b2_ref, o_ref):
    """x_out = x + W2 @ quickgelu(W1 @ LN2(x) + b1) + b2, row-tiled."""
    x = x_ref[...].astype(jnp.float32)                    # (tm, W)
    mu = jnp.mean(x, axis=-1, keepdims=True)
    var = jnp.mean((x - mu) ** 2, axis=-1, keepdims=True)
    h = (x - mu) * jax.lax.rsqrt(var + 1e-5) * g_ref[...] + b_ref[...]
    h1 = jnp.dot(h.astype(jnp.bfloat16), w1_ref[...],
                 preferred_element_type=jnp.float32) + b1_ref[...]
    h1 = h1 * jax.nn.sigmoid(1.702 * h1)                  # QuickGELU (CLIP)
    h2 = jnp.dot(h1.astype(jnp.bfloat16), w2_ref[...],
                 preferred_element_type=jnp.float32) + b2_ref[...]
    o_ref[...] = (x + h2).astype(o_ref.dtype)


def _ln_proj_norm_kernel(x_ref, g_ref, b_ref, w_ref, o_ref):
    """z = L2normalize(LN_final(feats) @ text_projection)."""
    x = x_ref[...].astype(jnp.float32)                    # (B, W)
    mu = jnp.mean(x, axis=-1, keepdims=True)
    var = jnp.mean((x - mu) ** 2, axis=-1, keepdims=True)
    h = (x - mu) * jax.lax.rsqrt(var + 1e-5) * g_ref[...] + b_ref[...]
    z = jnp.dot(h.astype(jnp.bfloat16), w_ref[...],
                preferred_element_type=jnp.float32)
    inv = jax.lax.rsqrt(jnp.sum(z * z, axis=-1, keepdims=True))  # EUP rsqrt
    o_ref[...] = (z * inv).astype(o_ref.dtype)


# ------------------------------- wrappers -----------------------------------

def _rep_spec(shape):
    """Full-extent block that is constant across the grid (stays VMEM-resident)."""
    nd = len(shape)
    return pl.BlockSpec(shape, lambda *_, nd=nd: (0,) * nd)


def pallas_attn_block(x, g1, b1, wq, bq, wk, bk, wv, bv, wo, bo, *, nh, scale):
    B, S, W = x.shape
    dh = W // nh
    xspec = pl.BlockSpec((1, S, W), lambda bb: (bb, 0, 0))
    return pl.pallas_call(
        functools.partial(_attn_block_kernel, nh=nh, scale=scale),
        out_shape=jax.ShapeDtypeStruct((B, S, W), jnp.bfloat16),
        grid=(B,),
        in_specs=[
            xspec,
            _rep_spec((1, W)), _rep_spec((1, W)),          # LN1 gamma / beta
            _rep_spec((nh, W, dh)), _rep_spec((nh, 1, dh)),  # Wq, bq
            _rep_spec((nh, W, dh)), _rep_spec((nh, 1, dh)),  # Wk, bk
            _rep_spec((nh, W, dh)), _rep_spec((nh, 1, dh)),  # Wv, bv
            _rep_spec((nh, dh, W)), _rep_spec((1, W)),       # Wout, bout
        ],
        out_specs=xspec,
        compiler_params=pltpu.CompilerParams(dimension_semantics=("parallel",)),
    )(x, g1, b1, wq, bq, wk, bk, wv, bv, wo, bo)


def pallas_ln_mlp_residual(x, g, b, w1, b1, w2, b2, *, tm=256):
    M, W = x.shape
    H = w1.shape[1]
    tm = tm if (M % tm == 0) else M                        # row tile (full if small)
    return pl.pallas_call(
        _ln_mlp_res_kernel,
        out_shape=jax.ShapeDtypeStruct((M, W), jnp.bfloat16),
        grid=(M // tm,),
        in_specs=[
            pl.BlockSpec((tm, W), lambda i: (i, 0)),
            _rep_spec((1, W)), _rep_spec((1, W)),
            _rep_spec((W, H)), _rep_spec((1, H)),
            _rep_spec((H, W)), _rep_spec((1, W)),
        ],
        out_specs=pl.BlockSpec((tm, W), lambda i: (i, 0)),
        compiler_params=pltpu.CompilerParams(dimension_semantics=("parallel",)),
    )(x, g.reshape(1, W), b.reshape(1, W), w1, b1.reshape(1, H), w2, b2.reshape(1, W))


def pallas_ln_proj_l2norm(feats, g, b, w):
    B, W = feats.shape
    E = w.shape[1]
    return pl.pallas_call(
        _ln_proj_norm_kernel,
        out_shape=jax.ShapeDtypeStruct((B, E), jnp.float32),
        grid=(1,),
        in_specs=[
            _rep_spec((B, W)), _rep_spec((1, W)), _rep_spec((1, W)), _rep_spec((W, E)),
        ],
        out_specs=_rep_spec((B, E)),
    )(feats, g.reshape(1, W), b.reshape(1, W), w)


# ------------------------- model (glue in plain JAX) ------------------------

CFG = dict(vocab=64, max_length=8, width=32, heads=4, layers=2, embed_dim=32)


def init_params(key, cfg):
    W, L, E, V, S = cfg["width"], cfg["layers"], cfg["embed_dim"], cfg["vocab"], cfg["max_length"]
    Hm = 4 * W
    keys = jax.random.split(key, 4 + 6 * L)
    params = {
        "token_emb": 0.02 * jax.random.normal(keys[0], (V, W), jnp.float32),
        "pos_emb": 0.01 * jax.random.normal(keys[1], (S, W), jnp.float32),
        "lnf_g": jnp.ones((W,), jnp.float32),
        "lnf_b": jnp.zeros((W,), jnp.float32),
        "text_proj": (W ** -0.5) * jax.random.normal(keys[2], (W, E), jnp.float32),
        "layers": [],
    }
    for l in range(L):
        k = keys[4 + 6 * l: 4 + 6 * (l + 1)]
        params["layers"].append({
            "ln1_g": jnp.ones((W,), jnp.float32), "ln1_b": jnp.zeros((W,), jnp.float32),
            "ln2_g": jnp.ones((W,), jnp.float32), "ln2_b": jnp.zeros((W,), jnp.float32),
            "attn_in_w": (W ** -0.5) * jax.random.normal(k[0], (W, 3 * W), jnp.float32),
            "attn_in_b": jnp.zeros((3 * W,), jnp.float32),
            "attn_out_w": (W ** -0.5) * jax.random.normal(k[1], (W, W), jnp.float32),
            "attn_out_b": jnp.zeros((W,), jnp.float32),
            "mlp_w1": (W ** -0.5) * jax.random.normal(k[2], (W, Hm), jnp.float32),
            "mlp_b1": jnp.zeros((Hm,), jnp.float32),
            "mlp_w2": (Hm ** -0.5) * jax.random.normal(k[3], (Hm, W), jnp.float32),
            "mlp_b2": jnp.zeros((W,), jnp.float32),
        })
    return params


def frozen_clip_text_embedder_forward(params, tokens, cfg):
    """Pallas implementation of FrozenCLIPTextEmbedder.forward (normalize=True)."""
    B, S = tokens.shape
    W, NH = cfg["width"], cfg["heads"]
    Dh = W // NH
    scale = Dh ** -0.5
    bf16 = jnp.bfloat16

    # Embedding lookup + positional embedding kept in plain JAX (tiny gather).
    x = jnp.take(params["token_emb"], tokens, axis=0) + params["pos_emb"][None]  # (B,S,W) f32
    x = x.astype(bf16)                                     # bf16 residual stream

    for lyr in params["layers"]:
        # Re-layout the fused QKV / out-proj weights per head (outside kernels).
        wqkv = lyr["attn_in_w"].astype(bf16)               # (W, 3W), cols = [3, NH, Dh]
        bqkv = lyr["attn_in_b"]
        wq = wqkv[:, 0 * W:1 * W].reshape(W, NH, Dh).transpose(1, 0, 2)  # (NH, W, Dh)
        wk = wqkv[:, 1 * W:2 * W].reshape(W, NH, Dh).transpose(1, 0, 2)
        wv = wqkv[:, 2 * W:3 * W].reshape(W, NH, Dh).transpose(1, 0, 2)
        bq = bqkv[0 * W:1 * W].reshape(NH, 1, Dh)
        bk = bqkv[1 * W:2 * W].reshape(NH, 1, Dh)
        bv = bqkv[2 * W:3 * W].reshape(NH, 1, Dh)
        wo = lyr["attn_out_w"].astype(bf16).reshape(NH, Dh, W)
        bo = lyr["attn_out_b"].reshape(1, W)

        # Fused: LN1 + QKV + causal MHA + out_proj + residual (one call / layer).
        x = pallas_attn_block(
            x, lyr["ln1_g"].reshape(1, W), lyr["ln1_b"].reshape(1, W),
            wq, bq, wk, bk, wv, bv, wo, bo, nh=NH, scale=scale)

        # Fused: LN2 + MLP(QuickGELU) + residual, row-tiled over B*S.
        xf = pallas_ln_mlp_residual(
            x.reshape(B * S, W), lyr["ln2_g"], lyr["ln2_b"],
            lyr["mlp_w1"].astype(bf16), lyr["mlp_b1"],
            lyr["mlp_w2"].astype(bf16), lyr["mlp_b2"])
        x = xf.reshape(B, S, W)

    # ln_final commutes with the EOT row gather (per-row op), so gather first.
    eot = jnp.argmax(tokens, axis=-1)                      # EOT token has highest id
    feats = x[jnp.arange(B), eot]                          # (B, W)
    z = pallas_ln_proj_l2norm(feats, params["lnf_g"], params["lnf_b"],
                              params["text_proj"].astype(bf16))
    return z


# ------------------------------ pure-JAX reference ---------------------------

def reference_forward(params, tokens, cfg):
    B, S = tokens.shape
    W, NH = cfg["width"], cfg["heads"]
    Dh = W // NH

    def ln(x, g, b):
        mu = jnp.mean(x, -1, keepdims=True)
        var = jnp.mean((x - mu) ** 2, -1, keepdims=True)
        return (x - mu) * jax.lax.rsqrt(var + 1e-5) * g + b

    x = jnp.take(params["token_emb"], tokens, axis=0) + params["pos_emb"][None]
    row = jnp.arange(S)[:, None]
    col = jnp.arange(S)[None, :]
    mask = col <= row
    for lyr in params["layers"]:
        h = ln(x, lyr["ln1_g"], lyr["ln1_b"])
        qkv = h @ lyr["attn_in_w"] + lyr["attn_in_b"]
        qkv = qkv.reshape(B, S, 3, NH, Dh)
        q = qkv[:, :, 0].transpose(0, 2, 1, 3)
        k = qkv[:, :, 1].transpose(0, 2, 1, 3)
        v = qkv[:, :, 2].transpose(0, 2, 1, 3)
        s = jnp.einsum("bhqd,bhkd->bhqk", q, k) * (Dh ** -0.5)
        s = jnp.where(mask[None, None], s, -jnp.inf)
        p = jax.nn.softmax(s, -1)
        a = jnp.einsum("bhqk,bhkd->bhqd", p, v).transpose(0, 2, 1, 3).reshape(B, S, W)
        x = x + (a @ lyr["attn_out_w"] + lyr["attn_out_b"])
        h = ln(x, lyr["ln2_g"], lyr["ln2_b"])
        h1 = h @ lyr["mlp_w1"] + lyr["mlp_b1"]
        h1 = h1 * jax.nn.sigmoid(1.702 * h1)
        x = x + (h1 @ lyr["mlp_w2"] + lyr["mlp_b2"])
    x = ln(x, params["lnf_g"], params["lnf_b"])
    feats = x[jnp.arange(B), jnp.argmax(tokens, -1)]
    z = feats @ params["text_proj"]
    return z / jnp.linalg.norm(z, axis=1, keepdims=True)


# ---------------------------------- main -------------------------------------

if __name__ == "__main__":
    key = jax.random.PRNGKey(0)
    pkey, tkey = jax.random.split(key)
    params = init_params(pkey, CFG)

    B, S, V = 2, CFG["max_length"], CFG["vocab"]
    # Synthetic "tokenized text": SOT, random BPE ids, EOT (= highest id, V-1).
    body = jax.random.randint(tkey, (B, S - 2), 2, V - 1, dtype=jnp.int32)
    tokens = jnp.concatenate(
        [jnp.full((B, 1), 1, jnp.int32), body, jnp.full((B, 1), V - 1, jnp.int32)],
        axis=1,
    )

    fwd = jax.jit(functools.partial(frozen_clip_text_embedder_forward, cfg=CFG))
    z = fwd(params, tokens)
    z = jax.block_until_ready(z)

    z_ref = reference_forward(params, tokens, CFG)
    assert z.shape == (B, CFG["embed_dim"])
    assert bool(jnp.all(jnp.isfinite(z)))
    # bf16 matmul operands / bf16 residual stream vs f32 reference -> loose tol.
    assert bool(jnp.allclose(z, z_ref, atol=2e-2, rtol=2e-2)), "mismatch vs reference"

    print("KERNEL_OK")
</pallas_src>

<mosaic_0001>
module attributes {stable_mosaic.version = 11 : i64} {
  func.func @_ln_mlp_res_kernel(%arg0: i32, %arg1: memref<16x32xbf16, #tpu.memory_space<vmem>>, %arg2: memref<1x32xf32, #tpu.memory_space<vmem>>, %arg3: memref<1x32xf32, #tpu.memory_space<vmem>>, %arg4: memref<32x128xbf16, #tpu.memory_space<vmem>>, %arg5: memref<1x128xf32, #tpu.memory_space<vmem>>, %arg6: memref<128x32xbf16, #tpu.memory_space<vmem>>, %arg7: memref<1x32xf32, #tpu.memory_space<vmem>>, %arg8: memref<16x32xbf16, #tpu.memory_space<vmem>>) attributes {dimension_semantics = [#tpu.dimension_semantics<parallel>], iteration_bounds = array<i64: 1>, scalar_prefetch = 0 : i64, scratch_operands = 0 : i64, tpu.core_type = #tpu.core_type<tc>, window_params = [{transform_indices = @transform_0, window_bounds = array<i64: 16, 32>}, {pipeline_mode = #tpu.pipeline_mode<synchronous>, transform_indices = @transform_1, window_bounds = array<i64: 1, 32>}, {pipeline_mode = #tpu.pipeline_mode<synchronous>, transform_indices = @transform_2, window_bounds = array<i64: 1, 32>}, {pipeline_mode = #tpu.pipeline_mode<synchronous>, transform_indices = @transform_3, window_bounds = array<i64: 32, 128>}, {pipeline_mode = #tpu.pipeline_mode<synchronous>, transform_indices = @transform_4, window_bounds = array<i64: 1, 128>}, {pipeline_mode = #tpu.pipeline_mode<synchronous>, transform_indices = @transform_5, window_bounds = array<i64: 128, 32>}, {pipeline_mode = #tpu.pipeline_mode<synchronous>, transform_indices = @transform_6, window_bounds = array<i64: 1, 32>}, {transform_indices = @transform_7, window_bounds = array<i64: 16, 32>}]} {
    %c0 = arith.constant 0 : index
    %c0_0 = arith.constant 0 : index
    %0 = vector.load %arg1[%c0, %c0_0] : memref<16x32xbf16, #tpu.memory_space<vmem>>, vector<16x32xbf16>
    %1 = arith.extf %0 : vector<16x32xbf16> to vector<16x32xf32>
    %cst = arith.constant dense<0.000000e+00> : vector<16xf32>
    %2 = vector.multi_reduction <add>, %1, %cst [1] : vector<16x32xf32> to vector<16xf32>
    %3 = vector.shape_cast %2 : vector<16xf32> to vector<16x1xf32>
    %cst_1 = arith.constant 3.200000e+01 : f32
    %4 = vector.broadcast %cst_1 : f32 to vector<16x1xf32>
    %5 = arith.divf %3, %4 : vector<16x1xf32>
    %6 = vector.broadcast %5 : vector<16x1xf32> to vector<16x32xf32>
    %7 = arith.subf %1, %6 : vector<16x32xf32>
    %8 = arith.mulf %7, %7 : vector<16x32xf32>
    %cst_2 = arith.constant dense<0.000000e+00> : vector<16xf32>
    %9 = vector.multi_reduction <add>, %8, %cst_2 [1] : vector<16x32xf32> to vector<16xf32>
    %10 = vector.shape_cast %9 : vector<16xf32> to vector<16x1xf32>
    %cst_3 = arith.constant 3.200000e+01 : f32
    %11 = vector.broadcast %cst_3 : f32 to vector<16x1xf32>
    %12 = arith.divf %10, %11 : vector<16x1xf32>
    %13 = vector.broadcast %5 : vector<16x1xf32> to vector<16x32xf32>
    %14 = arith.subf %1, %13 : vector<16x32xf32>
    %cst_4 = arith.constant 9.99999974E-6 : f32
    %15 = vector.broadcast %cst_4 : f32 to vector<16x1xf32>
    %16 = arith.addf %12, %15 : vector<16x1xf32>
    %17 = math.rsqrt %16 : vector<16x1xf32>
    %18 = vector.broadcast %17 : vector<16x1xf32> to vector<16x32xf32>
    %19 = arith.mulf %14, %18 : vector<16x32xf32>
    %c0_5 = arith.constant 0 : index
    %c0_6 = arith.constant 0 : index
    %20 = vector.load %arg2[%c0_5, %c0_6] : memref<1x32xf32, #tpu.memory_space<vmem>>, vector<1x32xf32>
    %21 = vector.broadcast %20 : vector<1x32xf32> to vector<16x32xf32>
    %22 = arith.mulf %19, %21 : vector<16x32xf32>
    %c0_7 = arith.constant 0 : index
    %c0_8 = arith.constant 0 : index
    %23 = vector.load %arg3[%c0_7, %c0_8] : memref<1x32xf32, #tpu.memory_space<vmem>>, vector<1x32xf32>
    %24 = vector.broadcast %23 : vector<1x32xf32> to vector<16x32xf32>
    %25 = arith.addf %22, %24 : vector<16x32xf32>
    %26 = arith.truncf %25 : vector<16x32xf32> to vector<16x32xbf16>
    %c0_9 = arith.constant 0 : index
    %c0_10 = arith.constant 0 : index
    %27 = vector.load %arg4[%c0_9, %c0_10] : memref<32x128xbf16, #tpu.memory_space<vmem>>, vector<32x128xbf16>
    %cst_11 = arith.constant dense<0.000000e+00> : vector<16x128xf32>
    %28 = tpu.matmul %26, %27, %cst_11 {dimension_numbers = #tpu.dot_dimension_numbers<[1], [0], [0], [1], [0, 0, 1, 1], [], []>} : vector<16x32xbf16>, vector<32x128xbf16>, vector<16x128xf32> -> vector<16x128xf32>
    %c0_12 = arith.constant 0 : index
    %c0_13 = arith.constant 0 : index
    %29 = vector.load %arg5[%c0_12, %c0_13] : memref<1x128xf32, #tpu.memory_space<vmem>>, vector<1x128xf32>
    %30 = vector.broadcast %29 : vector<1x128xf32> to vector<16x128xf32>
    %31 = arith.addf %28, %30 : vector<16x128xf32>
    %cst_14 = arith.constant 1.702000e+00 : f32
    %32 = vector.broadcast %cst_14 : f32 to vector<16x128xf32>
    %33 = arith.mulf %32, %31 : vector<16x128xf32>
    %34 = arith.negf %33 : vector<16x128xf32>
    %35 = math.exp %34 : vector<16x128xf32>
    %cst_15 = arith.constant 1.000000e+00 : f32
    %36 = vector.broadcast %cst_15 : f32 to vector<16x128xf32>
    %37 = arith.addf %36, %35 : vector<16x128xf32>
    %38 = arith.divf %36, %37 : vector<16x128xf32>
    %39 = arith.mulf %31, %38 : vector<16x128xf32>
    %40 = arith.truncf %39 : vector<16x128xf32> to vector<16x128xbf16>
    %c0_16 = arith.constant 0 : index
    %c0_17 = arith.constant 0 : index
    %41 = vector.load %arg6[%c0_16, %c0_17] : memref<128x32xbf16, #tpu.memory_space<vmem>>, vector<128x32xbf16>
    %cst_18 = arith.constant dense<0.000000e+00> : vector<16x32xf32>
    %42 = tpu.matmul %40, %41, %cst_18 {dimension_numbers = #tpu.dot_dimension_numbers<[1], [0], [0], [1], [0, 0, 1, 1], [], []>} : vector<16x128xbf16>, vector<128x32xbf16>, vector<16x32xf32> -> vector<16x32xf32>
    %c0_19 = arith.constant 0 : index
    %c0_20 = arith.constant 0 : index
    %43 = vector.load %arg7[%c0_19, %c0_20] : memref<1x32xf32, #tpu.memory_space<vmem>>, vector<1x32xf32>
    %44 = vector.broadcast %43 : vector<1x32xf32> to vector<16x32xf32>
    %45 = arith.addf %42, %44 : vector<16x32xf32>
    %46 = arith.addf %1, %45 : vector<16x32xf32>
    %47 = arith.truncf %46 : vector<16x32xf32> to vector<16x32xbf16>
    %c0_21 = arith.constant 0 : index
    %c0_22 = arith.constant 0 : index
    %48 = vector.load %arg8[%c0_21, %c0_22] : memref<16x32xbf16, #tpu.memory_space<vmem>>, vector<16x32xbf16>
    tpu.vector_store %arg8[%c0_21, %c0_22], %47 {strides = array<i32>} : memref<16x32xbf16, #tpu.memory_space<vmem>>, vector<16x32xbf16>,
    return
  }
  func.func @transform_0(%arg0: i32) -> (i32, i32) {
    %c0_i32 = arith.constant 0 : i32
    %c0_i32_0 = arith.constant 0 : i32
    return %arg0, %c0_i32 : i32, i32
  }
  func.func @transform_1(%arg0: i32) -> (i32, i32) {
    %c0_i32 = arith.constant 0 : i32
    %c0_i32_0 = arith.constant 0 : i32
    %c0_i32_1 = arith.constant 0 : i32
    return %c0_i32, %c0_i32_0 : i32, i32
  }
  func.func @transform_2(%arg0: i32) -> (i32, i32) {
    %c0_i32 = arith.constant 0 : i32
    %c0_i32_0 = arith.constant 0 : i32
    %c0_i32_1 = arith.constant 0 : i32
    return %c0_i32, %c0_i32_0 : i32, i32
  }
  func.func @transform_3(%arg0: i32) -> (i32, i32) {
    %c0_i32 = arith.constant 0 : i32
    %c0_i32_0 = arith.constant 0 : i32
    %c0_i32_1 = arith.constant 0 : i32
    return %c0_i32, %c0_i32_0 : i32, i32
  }
  func.func @transform_4(%arg0: i32) -> (i32, i32) {
    %c0_i32 = arith.constant 0 : i32
    %c0_i32_0 = arith.constant 0 : i32
    %c0_i32_1 = arith.constant 0 : i32
    return %c0_i32, %c0_i32_0 : i32, i32
  }
  func.func @transform_5(%arg0: i32) -> (i32, i32) {
    %c0_i32 = arith.constant 0 : i32
    %c0_i32_0 = arith.constant 0 : i32
    %c0_i32_1 = arith.constant 0 : i32
    return %c0_i32, %c0_i32_0 : i32, i32
  }
  func.func @transform_6(%arg0: i32) -> (i32, i32) {
    %c0_i32 = arith.constant 0 : i32
    %c0_i32_0 = arith.constant 0 : i32
    %c0_i32_1 = arith.constant 0 : i32
    return %c0_i32, %c0_i32_0 : i32, i32
  }
  func.func @transform_7(%arg0: i32) -> (i32, i32) {
    %c0_i32 = arith.constant 0 : i32
    %c0_i32_0 = arith.constant 0 : i32
    return %arg0, %c0_i32 : i32, i32
  }
}

module attributes {stable_mosaic.version = 11 : i64} {
  func.func @_attn_block_kernel(%arg0: i32, %arg1: memref<1x8x32xbf16, #tpu.memory_space<vmem>>, %arg2: memref<1x32xf32, #tpu.memory_space<vmem>>, %arg3: memref<1x32xf32, #tpu.memory_space<vmem>>, %arg4: memref<4x32x8xbf16, #tpu.memory_space<vmem>>, %arg5: memref<4x1x8xf32, #tpu.memory_space<vmem>>, %arg6: memref<4x32x8xbf16, #tpu.memory_space<vmem>>, %arg7: memref<4x1x8xf32, #tpu.memory_space<vmem>>, %arg8: memref<4x32x8xbf16, #tpu.memory_space<vmem>>, %arg9: memref<4x1x8xf32, #tpu.memory_space<vmem>>, %arg10: memref<4x8x32xbf16, #tpu.memory_space<vmem>>, %arg11: memref<1x32xf32, #tpu.memory_space<vmem>>, %arg12: memref<1x8x32xbf16, #tpu.memory_space<vmem>>) attributes {dimension_semantics = [#tpu.dimension_semantics<parallel>], iteration_bounds = array<i64: 2>, scalar_prefetch = 0 : i64, scratch_operands = 0 : i64, tpu.core_type = #tpu.core_type<tc>, window_params = [{transform_indices = @transform_0, window_bounds = array<i64: 1, 8, 32>}, {pipeline_mode = #tpu.pipeline_mode<synchronous>, transform_indices = @transform_1, window_bounds = array<i64: 1, 32>}, {pipeline_mode = #tpu.pipeline_mode<synchronous>, transform_indices = @transform_2, window_bounds = array<i64: 1, 32>}, {pipeline_mode = #tpu.pipeline_mode<synchronous>, transform_indices = @transform_3, window_bounds = array<i64: 4, 32, 8>}, {pipeline_mode = #tpu.pipeline_mode<synchronous>, transform_indices = @transform_4, window_bounds = array<i64: 4, 1, 8>}, {pipeline_mode = #tpu.pipeline_mode<synchronous>, transform_indices = @transform_5, window_bounds = array<i64: 4, 32, 8>}, {pipeline_mode = #tpu.pipeline_mode<synchronous>, transform_indices = @transform_6, window_bounds = array<i64: 4, 1, 8>}, {pipeline_mode = #tpu.pipeline_mode<synchronous>, transform_indices = @transform_7, window_bounds = array<i64: 4, 32, 8>}, {pipeline_mode = #tpu.pipeline_mode<synchronous>, transform_indices = @transform_8, window_bounds = array<i64: 4, 1, 8>}, {pipeline_mode = #tpu.pipeline_mode<synchronous>, transform_indices = @transform_9, window_bounds = array<i64: 4, 8, 32>}, {pipeline_mode = #tpu.pipeline_mode<synchronous>, transform_indices = @transform_10, window_bounds = array<i64: 1, 32>}, {transform_indices = @transform_11, window_bounds = array<i64: 1, 8, 32>}]} {
    %c0 = arith.constant 0 : index
    %c0_0 = arith.constant 0 : index
    %c0_1 = arith.constant 0 : index
    %0 = vector.load %arg1[%c0, %c0_0, %c0_1] : memref<1x8x32xbf16, #tpu.memory_space<vmem>>, vector<1x8x32xbf16>
    %1 = vector.shape_cast %0 : vector<1x8x32xbf16> to vector<8x32xbf16>
    %2 = arith.extf %1 : vector<8x32xbf16> to vector<8x32xf32>
    %cst = arith.constant dense<0.000000e+00> : vector<8xf32>
    %3 = vector.multi_reduction <add>, %2, %cst [1] : vector<8x32xf32> to vector<8xf32>
    %4 = vector.shape_cast %3 : vector<8xf32> to vector<8x1xf32>
    %cst_2 = arith.constant 3.200000e+01 : f32
    %5 = vector.broadcast %cst_2 : f32 to vector<8x1xf32>
    %6 = arith.divf %4, %5 : vector<8x1xf32>
    %7 = vector.broadcast %6 : vector<8x1xf32> to vector<8x32xf32>
    %8 = arith.subf %2, %7 : vector<8x32xf32>
    %9 = arith.mulf %8, %8 : vector<8x32xf32>
    %cst_3 = arith.constant dense<0.000000e+00> : vector<8xf32>
    %10 = vector.multi_reduction <add>, %9, %cst_3 [1] : vector<8x32xf32> to vector<8xf32>
    %11 = vector.shape_cast %10 : vector<8xf32> to vector<8x1xf32>
    %cst_4 = arith.constant 3.200000e+01 : f32
    %12 = vector.broadcast %cst_4 : f32 to vector<8x1xf32>
    %13 = arith.divf %11, %12 : vector<8x1xf32>
    %14 = vector.broadcast %6 : vector<8x1xf32> to vector<8x32xf32>
    %15 = arith.subf %2, %14 : vector<8x32xf32>
    %cst_5 = arith.constant 9.99999974E-6 : f32
    %16 = vector.broadcast %cst_5 : f32 to vector<8x1xf32>
    %17 = arith.addf %13, %16 : vector<8x1xf32>
    %18 = math.rsqrt %17 : vector<8x1xf32>
    %19 = vector.broadcast %18 : vector<8x1xf32> to vector<8x32xf32>
    %20 = arith.mulf %15, %19 : vector<8x32xf32>
    %c0_6 = arith.constant 0 : index
    %c0_7 = arith.constant 0 : index
    %21 = vector.load %arg2[%c0_6, %c0_7] : memref<1x32xf32, #tpu.memory_space<vmem>>, vector<1x32xf32>
    %22 = vector.broadcast %21 : vector<1x32xf32> to vector<8x32xf32>
    %23 = arith.mulf %20, %22 : vector<8x32xf32>
    %c0_8 = arith.constant 0 : index
    %c0_9 = arith.constant 0 : index
    %24 = vector.load %arg3[%c0_8, %c0_9] : memref<1x32xf32, #tpu.memory_space<vmem>>, vector<1x32xf32>
    %25 = vector.broadcast %24 : vector<1x32xf32> to vector<8x32xf32>
    %26 = arith.addf %23, %25 : vector<8x32xf32>
    %27 = arith.truncf %26 : vector<8x32xf32> to vector<8x32xbf16>
    %28 = tpu.iota {dimensions = array<i32: 0>} : vector<8x8xi32>
    %29 = tpu.iota {dimensions = array<i32: 1>} : vector<8x8xi32>
    %30 = arith.cmpi sle, %29, %28 : vector<8x8xi32>
    %cst_10 = arith.constant 0.000000e+00 : f32
    %31 = vector.broadcast %cst_10 : f32 to vector<8x32xf32>
    %c0_11 = arith.constant 0 : index
    %c0_12 = arith.constant 0 : index
    %c0_13 = arith.constant 0 : index
    %32 = vector.load %arg4[%c0_11, %c0_12, %c0_13] : memref<4x32x8xbf16, #tpu.memory_space<vmem>>, vector<1x32x8xbf16>
    %33 = vector.shape_cast %32 : vector<1x32x8xbf16> to vector<32x8xbf16>
    %cst_14 = arith.constant dense<0.000000e+00> : vector<8x8xf32>
    %34 = tpu.matmul %27, %33, %cst_14 {dimension_numbers = #tpu.dot_dimension_numbers<[1], [0], [0], [1], [0, 0, 1, 1], [], []>} : vector<8x32xbf16>, vector<32x8xbf16>, vector<8x8xf32> -> vector<8x8xf32>
    %c0_15 = arith.constant 0 : index
    %c0_16 = arith.constant 0 : index
    %c0_17 = arith.constant 0 : index
    %35 = vector.load %arg5[%c0_15, %c0_16, %c0_17] : memref<4x1x8xf32, #tpu.memory_space<vmem>>, vector<1x1x8xf32>
    %36 = vector.shape_cast %35 : vector<1x1x8xf32> to vector<1x8xf32>
    %37 = vector.broadcast %36 : vector<1x8xf32> to vector<8x8xf32>
    %38 = arith.addf %34, %37 : vector<8x8xf32>
    %c0_18 = arith.constant 0 : index
    %c0_19 = arith.constant 0 : index
    %c0_20 = arith.constant 0 : index
    %39 = vector.load %arg6[%c0_18, %c0_19, %c0_20] : memref<4x32x8xbf16, #tpu.memory_space<vmem>>, vector<1x32x8xbf16>
    %40 = vector.shape_cast %39 : vector<1x32x8xbf16> to vector<32x8xbf16>
    %cst_21 = arith.constant dense<0.000000e+00> : vector<8x8xf32>
    %41 = tpu.matmul %27, %40, %cst_21 {dimension_numbers = #tpu.dot_dimension_numbers<[1], [0], [0], [1], [0, 0, 1, 1], [], []>} : vector<8x32xbf16>, vector<32x8xbf16>, vector<8x8xf32> -> vector<8x8xf32>
    %c0_22 = arith.constant 0 : index
    %c0_23 = arith.constant 0 : index
    %c0_24 = arith.constant 0 : index
    %42 = vector.load %arg7[%c0_22, %c0_23, %c0_24] : memref<4x1x8xf32, #tpu.memory_space<vmem>>, vector<1x1x8xf32>
    %43 = vector.shape_cast %42 : vector<1x1x8xf32> to vector<1x8xf32>
    %44 = vector.broadcast %43 : vector<1x8xf32> to vector<8x8xf32>
    %45 = arith.addf %41, %44 : vector<8x8xf32>
    %c0_25 = arith.constant 0 : index
    %c0_26 = arith.constant 0 : index
    %c0_27 = arith.constant 0 : index
    %46 = vector.load %arg8[%c0_25, %c0_26, %c0_27] : memref<4x32x8xbf16, #tpu.memory_space<vmem>>, vector<1x32x8xbf16>
    %47 = vector.shape_cast %46 : vector<1x32x8xbf16> to vector<32x8xbf16>
    %cst_28 = arith.constant dense<0.000000e+00> : vector<8x8xf32>
    %48 = tpu.matmul %27, %47, %cst_28 {dimension_numbers = #tpu.dot_dimension_numbers<[1], [0], [0], [1], [0, 0, 1, 1], [], []>} : vector<8x32xbf16>, vector<32x8xbf16>, vector<8x8xf32> -> vector<8x8xf32>
    %c0_29 = arith.constant 0 : index
    %c0_30 = arith.constant 0 : index
    %c0_31 = arith.constant 0 : index
    %49 = vector.load %arg9[%c0_29, %c0_30, %c0_31] : memref<4x1x8xf32, #tpu.memory_space<vmem>>, vector<1x1x8xf32>
    %50 = vector.shape_cast %49 : vector<1x1x8xf32> to vector<1x8xf32>
    %51 = vector.broadcast %50 : vector<1x8xf32> to vector<8x8xf32>
    %52 = arith.addf %48, %51 : vector<8x8xf32>
    %53 = arith.truncf %38 : vector<8x8xf32> to vector<8x8xbf16>
    %54 = arith.truncf %45 : vector<8x8xf32> to vector<8x8xbf16>
    %cst_32 = arith.constant dense<0.000000e+00> : vector<8x8xf32>
    %55 = tpu.matmul %53, %54, %cst_32 {dimension_numbers = #tpu.dot_dimension_numbers<[1], [1], [0], [0], [0, 0, 1, 0], [], []>} : vector<8x8xbf16>, vector<8x8xbf16>, vector<8x8xf32> -> vector<8x8xf32>
    %cst_33 = arith.constant 0.353553385 : f32
    %56 = vector.broadcast %cst_33 : f32 to vector<8x8xf32>
    %57 = arith.mulf %55, %56 : vector<8x8xf32>
    %cst_34 = arith.constant 0xFF800000 : f32
    %58 = vector.broadcast %cst_34 : f32 to vector<8x8xf32>
    %59 = arith.select %30, %57, %58 : vector<8x8xi1>, vector<8x8xf32>
    %cst_35 = arith.constant dense<0xFF800000> : vector<8xf32>
    %60 = vector.multi_reduction <maximumf>, %59, %cst_35 [1] : vector<8x8xf32> to vector<8xf32>
    %61 = vector.shape_cast %60 : vector<8xf32> to vector<8x1xf32>
    %62 = vector.broadcast %61 : vector<8x1xf32> to vector<8x8xf32>
    %63 = arith.subf %59, %62 : vector<8x8xf32>
    %64 = math.exp %63 : vector<8x8xf32>
    %cst_36 = arith.constant dense<0.000000e+00> : vector<8xf32>
    %65 = vector.multi_reduction <add>, %64, %cst_36 [1] : vector<8x8xf32> to vector<8xf32>
    %66 = vector.shape_cast %65 : vector<8xf32> to vector<8x1xf32>
    %67 = vector.broadcast %66 : vector<8x1xf32> to vector<8x8xf32>
    %68 = arith.divf %64, %67 : vector<8x8xf32>
    %69 = arith.truncf %68 : vector<8x8xf32> to vector<8x8xbf16>
    %70 = arith.truncf %52 : vector<8x8xf32> to vector<8x8xbf16>
    %cst_37 = arith.constant dense<0.000000e+00> : vector<8x8xf32>
    %71 = tpu.matmul %69, %70, %cst_37 {dimension_numbers = #tpu.dot_dimension_numbers<[1], [0], [0], [1], [0, 0, 1, 1], [], []>} : vector<8x8xbf16>, vector<8x8xbf16>, vector<8x8xf32> -> vector<8x8xf32>
    %72 = arith.truncf %71 : vector<8x8xf32> to vector<8x8xbf16>
    %c0_38 = arith.constant 0 : index
    %c0_39 = arith.constant 0 : index
    %c0_40 = arith.constant 0 : index
    %73 = vector.load %arg10[%c0_38, %c0_39, %c0_40] : memref<4x8x32xbf16, #tpu.memory_space<vmem>>, vector<1x8x32xbf16>
    %74 = vector.shape_cast %73 : vector<1x8x32xbf16> to vector<8x32xbf16>
    %cst_41 = arith.constant dense<0.000000e+00> : vector<8x32xf32>
    %75 = tpu.matmul %72, %74, %cst_41 {dimension_numbers = #tpu.dot_dimension_numbers<[1], [0], [0], [1], [0, 0, 1, 1], [], []>} : vector<8x8xbf16>, vector<8x32xbf16>, vector<8x32xf32> -> vector<8x32xf32>
    %76 = arith.addf %31, %75 : vector<8x32xf32>
    %c1 = arith.constant 1 : index
    %c0_42 = arith.constant 0 : index
    %c0_43 = arith.constant 0 : index
    %77 = vector.load %arg4[%c1, %c0_42, %c0_43] : memref<4x32x8xbf16, #tpu.memory_space<vmem>>, vector<1x32x8xbf16>
    %78 = vector.shape_cast %77 : vector<1x32x8xbf16> to vector<32x8xbf16>
    %cst_44 = arith.constant dense<0.000000e+00> : vector<8x8xf32>
    %79 = tpu.matmul %27, %78, %cst_44 {dimension_numbers = #tpu.dot_dimension_numbers<[1], [0], [0], [1], [0, 0, 1, 1], [], []>} : vector<8x32xbf16>, vector<32x8xbf16>, vector<8x8xf32> -> vector<8x8xf32>
    %c1_45 = arith.constant 1 : index
    %c0_46 = arith.constant 0 : index
    %c0_47 = arith.constant 0 : index
    %80 = vector.load %arg5[%c1_45, %c0_46, %c0_47] : memref<4x1x8xf32, #tpu.memory_space<vmem>>, vector<1x1x8xf32>
    %81 = vector.shape_cast %80 : vector<1x1x8xf32> to vector<1x8xf32>
    %82 = vector.broadcast %81 : vector<1x8xf32> to vector<8x8xf32>
    %83 = arith.addf %79, %82 : vector<8x8xf32>
    %c1_48 = arith.constant 1 : index
    %c0_49 = arith.constant 0 : index
    %c0_50 = arith.constant 0 : index
    %84 = vector.load %arg6[%c1_48, %c0_49, %c0_50] : memref<4x32x8xbf16, #tpu.memory_space<vmem>>, vector<1x32x8xbf16>
    %85 = vector.shape_cast %84 : vector<1x32x8xbf16> to vector<32x8xbf16>
    %cst_51 = arith.constant dense<0.000000e+00> : vector<8x8xf32>
    %86 = tpu.matmul %27, %85, %cst_51 {dimension_numbers = #tpu.dot_dimension_numbers<[1], [0], [0], [1], [0, 0, 1, 1], [], []>} : vector<8x32xbf16>, vector<32x8xbf16>, vector<8x8xf32> -> vector<8x8xf32>
    %c1_52 = arith.constant 1 : index
    %c0_53 = arith.constant 0 : index
    %c0_54 = arith.constant 0 : index
    %87 = vector.load %arg7[%c1_52, %c0_53, %c0_54] : memref<4x1x8xf32, #tpu.memory_space<vmem>>, vector<1x1x8xf32>
    %88 = vector.shape_cast %87 : vector<1x1x8xf32> to vector<1x8xf32>
    %89 = vector.broadcast %88 : vector<1x8xf32> to vector<8x8xf32>
    %90 = arith.addf %86, %89 : vector<8x8xf32>
    %c1_55 = arith.constant 1 : index
    %c0_56 = arith.constant 0 : index
    %c0_57 = arith.constant 0 : index
    %91 = vector.load %arg8[%c1_55, %c0_56, %c0_57] : memref<4x32x8xbf16, #tpu.memory_space<vmem>>, vector<1x32x8xbf16>
    %92 = vector.shape_cast %91 : vector<1x32x8xbf16> to vector<32x8xbf16>
    %cst_58 = arith.constant dense<0.000000e+00> : vector<8x8xf32>
    %93 = tpu.matmul %27, %92, %cst_58 {dimension_numbers = #tpu.dot_dimension_numbers<[1], [0], [0], [1], [0, 0, 1, 1], [], []>} : vector<8x32xbf16>, vector<32x8xbf16>, vector<8x8xf32> -> vector<8x8xf32>
    %c1_59 = arith.constant 1 : index
    %c0_60 = arith.constant 0 : index
    %c0_61 = arith.constant 0 : index
    %94 = vector.load %arg9[%c1_59, %c0_60, %c0_61] : memref<4x1x8xf32, #tpu.memory_space<vmem>>, vector<1x1x8xf32>
    %95 = vector.shape_cast %94 : vector<1x1x8xf32> to vector<1x8xf32>
    %96 = vector.broadcast %95 : vector<1x8xf32> to vector<8x8xf32>
    %97 = arith.addf %93, %96 : vector<8x8xf32>
    %98 = arith.truncf %83 : vector<8x8xf32> to vector<8x8xbf16>
    %99 = arith.truncf %90 : vector<8x8xf32> to vector<8x8xbf16>
    %cst_62 = arith.constant dense<0.000000e+00> : vector<8x8xf32>
    %100 = tpu.matmul %98, %99, %cst_62 {dimension_numbers = #tpu.dot_dimension_numbers<[1], [1], [0], [0], [0, 0, 1, 0], [], []>} : vector<8x8xbf16>, vector<8x8xbf16>, vector<8x8xf32> -> vector<8x8xf32>
    %cst_63 = arith.constant 0.353553385 : f32
    %101 = vector.broadcast %cst_63 : f32 to vector<8x8xf32>
    %102 = arith.mulf %100, %101 : vector<8x8xf32>
    %cst_64 = arith.constant 0xFF800000 : f32
    %103 = vector.broadcast %cst_64 : f32 to vector<8x8xf32>
    %104 = arith.select %30, %102, %103 : vector<8x8xi1>, vector<8x8xf32>
    %cst_65 = arith.constant dense<0xFF800000> : vector<8xf32>
    %105 = vector.multi_reduction <maximumf>, %104, %cst_65 [1] : vector<8x8xf32> to vector<8xf32>
    %106 = vector.shape_cast %105 : vector<8xf32> to vector<8x1xf32>
    %107 = vector.broadcast %106 : vector<8x1xf32> to vector<8x8xf32>
    %108 = arith.subf %104, %107 : vector<8x8xf32>
    %109 = math.exp %108 : vector<8x8xf32>
    %cst_66 = arith.constant dense<0.000000e+00> : vector<8xf32>
    %110 = vector.multi_reduction <add>, %109, %cst_66 [1] : vector<8x8xf32> to vector<8xf32>
    %111 = vector.shape_cast %110 : vector<8xf32> to vector<8x1xf32>
    %112 = vector.broadcast %111 : vector<8x1xf32> to vector<8x8xf32>
    %113 = arith.divf %109, %112 : vector<8x8xf32>
    %114 = arith.truncf %113 : vector<8x8xf32> to vector<8x8xbf16>
    %115 = arith.truncf %97 : vector<8x8xf32> to vector<8x8xbf16>
    %cst_67 = arith.constant dense<0.000000e+00> : vector<8x8xf32>
    %116 = tpu.matmul %114, %115, %cst_67 {dimension_numbers = #tpu.dot_dimension_numbers<[1], [0], [0], [1], [0, 0, 1, 1], [], []>} : vector<8x8xbf16>, vector<8x8xbf16>, vector<8x8xf32> -> vector<8x8xf32>
    %117 = arith.truncf %116 : vector<8x8xf32> to vector<8x8xbf16>
    %c1_68 = arith.constant 1 : index
    %c0_69 = arith.constant 0 : index
    %c0_70 = arith.constant 0 : index
    %118 = vector.load %arg10[%c1_68, %c0_69, %c0_70] : memref<4x8x32xbf16, #tpu.memory_space<vmem>>, vector<1x8x32xbf16>
    %119 = vector.shape_cast %118 : vector<1x8x32xbf16> to vector<8x32xbf16>
    %cst_71 = arith.constant dense<0.000000e+00> : vector<8x32xf32>
    %120 = tpu.matmul %117, %119, %cst_71 {dimension_numbers = #tpu.dot_dimension_numbers<[1], [0], [0], [1], [0, 0, 1, 1], [], []>} : vector<8x8xbf16>, vector<8x32xbf16>, vector<8x32xf32> -> vector<8x32xf32>
    %121 = arith.addf %76, %120 : vector<8x32xf32>
    %c2 = arith.constant 2 : index
    %c0_72 = arith.constant 0 : index
    %c0_73 = arith.constant 0 : index
    %122 = vector.load %arg4[%c2, %c0_72, %c0_73] : memref<4x32x8xbf16, #tpu.memory_space<vmem>>, vector<1x32x8xbf16>
    %123 = vector.shape_cast %122 : vector<1x32x8xbf16> to vector<32x8xbf16>
    %cst_74 = arith.constant dense<0.000000e+00> : vector<8x8xf32>
    %124 = tpu.matmul %27, %123, %cst_74 {dimension_numbers = #tpu.dot_dimension_numbers<[1], [0], [0], [1], [0, 0, 1, 1], [], []>} : vector<8x32xbf16>, vector<32x8xbf16>, vector<8x8xf32> -> vector<8x8xf32>
    %c2_75 = arith.constant 2 : index
    %c0_76 = arith.constant 0 : index
    %c0_77 = arith.constant 0 : index
    %125 = vector.load %arg5[%c2_75, %c0_76, %c0_77] : memref<4x1x8xf32, #tpu.memory_space<vmem>>, vector<1x1x8xf32>
    %126 = vector.shape_cast %125 : vector<1x1x8xf32> to vector<1x8xf32>
    %127 = vector.broadcast %126 : vector<1x8xf32> to vector<8x8xf32>
    %128 = arith.addf %124, %127 : vector<8x8xf32>
    %c2_78 = arith.constant 2 : index
    %c0_79 = arith.constant 0 : index
    %c0_80 = arith.constant 0 : index
    %129 = vector.load %arg6[%c2_78, %c0_79, %c0_80] : memref<4x32x8xbf16, #tpu.memory_space<vmem>>, vector<1x32x8xbf16>
    %130 = vector.shape_cast %129 : vector<1x32x8xbf16> to vector<32x8xbf16>
    %cst_81 = arith.constant dense<0.000000e+00> : vector<8x8xf32>
    %131 = tpu.matmul %27, %130, %cst_81 {dimension_numbers = #tpu.dot_dimension_numbers<[1], [0], [0], [1], [0, 0, 1, 1], [], []>} : vector<8x32xbf16>, vector<32x8xbf16>, vector<8x8xf32> -> vector<8x8xf32>
    %c2_82 = arith.constant 2 : index
    %c0_83 = arith.constant 0 : index
    %c0_84 = arith.constant 0 : index
    %132 = vector.load %arg7[%c2_82, %c0_83, %c0_84] : memref<4x1x8xf32, #tpu.memory_space<vmem>>, vector<1x1x8xf32>
    %133 = vector.shape_cast %132 : vector<1x1x8xf32> to vector<1x8xf32>
    %134 = vector.broadcast %133 : vector<1x8xf32> to vector<8x8xf32>
    %135 = arith.addf %131, %134 : vector<8x8xf32>
    %c2_85 = arith.constant 2 : index
    %c0_86 = arith.constant 0 : index
    %c0_87 = arith.constant 0 : index
    %136 = vector.load %arg8[%c2_85, %c0_86, %c0_87] : memref<4x32x8xbf16, #tpu.memory_space<vmem>>, vector<1x32x8xbf16>
    %137 = vector.shape_cast %136 : vector<1x32x8xbf16> to vector<32x8xbf16>
    %cst_88 = arith.constant dense<0.000000e+00> : vector<8x8xf32>
    %138 = tpu.matmul %27, %137, %cst_88 {dimension_numbers = #tpu.dot_dimension_numbers<[1], [0], [0], [1], [0, 0, 1, 1], [], []>} : vector<8x32xbf16>, vector<32x8xbf16>, vector<8x8xf32> -> vector<8x8xf32>
    %c2_89 = arith.constant 2 : index
    %c0_90 = arith.constant 0 : index
    %c0_91 = arith.constant 0 : index
    %139 = vector.load %arg9[%c2_89, %c0_90, %c0_91] : memref<4x1x8xf32, #tpu.memory_space<vmem>>, vector<1x1x8xf32>
    %140 = vector.shape_cast %139 : vector<1x1x8xf32> to vector<1x8xf32>
    %141 = vector.broadcast %140 : vector<1x8xf32> to vector<8x8xf32>
    %142 = arith.addf %138, %141 : vector<8x8xf32>
    %143 = arith.truncf %128 : vector<8x8xf32> to vector<8x8xbf16>
    %144 = arith.truncf %135 : vector<8x8xf32> to vector<8x8xbf16>
    %cst_92 = arith.constant dense<0.000000e+00> : vector<8x8xf32>
    %145 = tpu.matmul %143, %144, %cst_92 {dimension_numbers = #tpu.dot_dimension_numbers<[1], [1], [0], [0], [0, 0, 1, 0], [], []>} : vector<8x8xbf16>, vector<8x8xbf16>, vector<8x8xf32> -> vector<8x8xf32>
    %cst_93 = arith.constant 0.353553385 : f32
    %146 = vector.broadcast %cst_93 : f32 to vector<8x8xf32>
    %147 = arith.mulf %145, %146 : vector<8x8xf32>
    %cst_94 = arith.constant 0xFF800000 : f32
    %148 = vector.broadcast %cst_94 : f32 to vector<8x8xf32>
    %149 = arith.select %30, %147, %148 : vector<8x8xi1>, vector<8x8xf32>
    %cst_95 = arith.constant dense<0xFF800000> : vector<8xf32>
    %150 = vector.multi_reduction <maximumf>, %149, %cst_95 [1] : vector<8x8xf32> to vector<8xf32>
    %151 = vector.shape_cast %150 : vector<8xf32> to vector<8x1xf32>
    %152 = vector.broadcast %151 : vector<8x1xf32> to vector<8x8xf32>
    %153 = arith.subf %149, %152 : vector<8x8xf32>
    %154 = math.exp %153 : vector<8x8xf32>
    %cst_96 = arith.constant dense<0.000000e+00> : vector<8xf32>
    %155 = vector.multi_reduction <add>, %154, %cst_96 [1] : vector<8x8xf32> to vector<8xf32>
    %156 = vector.shape_cast %155 : vector<8xf32> to vector<8x1xf32>
    %157 = vector.broadcast %156 : vector<8x1xf32> to vector<8x8xf32>
    %158 = arith.divf %154, %157 : vector<8x8xf32>
    %159 = arith.truncf %158 : vector<8x8xf32> to vector<8x8xbf16>
    %160 = arith.truncf %142 : vector<8x8xf32> to vector<8x8xbf16>
    %cst_97 = arith.constant dense<0.000000e+00> : vector<8x8xf32>
    %161 = tpu.matmul %159, %160, %cst_97 {dimension_numbers = #tpu.dot_dimension_numbers<[1], [0], [0], [1], [0, 0, 1, 1], [], []>} : vector<8x8xbf16>, vector<8x8xbf16>, vector<8x8xf32> -> vector<8x8xf32>
    %162 = arith.truncf %161 : vector<8x8xf32> to vector<8x8xbf16>
    %c2_98 = arith.constant 2 : index
    %c0_99 = arith.constant 0 : index
    %c0_100 = arith.constant 0 : index
    %163 = vector.load %arg10[%c2_98, %c0_99, %c0_100] : memref<4x8x32xbf16, #tpu.memory_space<vmem>>, vector<1x8x32xbf16>
    %164 = vector.shape_cast %163 : vector<1x8x32xbf16> to vector<8x32xbf16>
    %cst_101 = arith.constant dense<0.000000e+00> : vector<8x32xf32>
    %165 = tpu.matmul %162, %164, %cst_101 {dimension_numbers = #tpu.dot_dimension_numbers<[1], [0], [0], [1], [0, 0, 1, 1], [], []>} : vector<8x8xbf16>, vector<8x32xbf16>, vector<8x32xf32> -> vector<8x32xf32>
    %166 = arith.addf %121, %165 : vector<8x32xf32>
    %c3 = arith.constant 3 : index
    %c0_102 = arith.constant 0 : index
    %c0_103 = arith.constant 0 : index
    %167 = vector.load %arg4[%c3, %c0_102, %c0_103] : memref<4x32x8xbf16, #tpu.memory_space<vmem>>, vector<1x32x8xbf16>
    %168 = vector.shape_cast %167 : vector<1x32x8xbf16> to vector<32x8xbf16>
    %cst_104 = arith.constant dense<0.000000e+00> : vector<8x8xf32>
    %169 = tpu.matmul %27, %168, %cst_104 {dimension_numbers = #tpu.dot_dimension_numbers<[1], [0], [0], [1], [0, 0, 1, 1], [], []>} : vector<8x32xbf16>, vector<32x8xbf16>, vector<8x8xf32> -> vector<8x8xf32>
    %c3_105 = arith.constant 3 : index
    %c0_106 = arith.constant 0 : index
    %c0_107 = arith.constant 0 : index
    %170 = vector.load %arg5[%c3_105, %c0_106, %c0_107] : memref<4x1x8xf32, #tpu.memory_space<vmem>>, vector<1x1x8xf32>
    %171 = vector.shape_cast %170 : vector<1x1x8xf32> to vector<1x8xf32>
    %172 = vector.broadcast %171 : vector<1x8xf32> to vector<8x8xf32>
    %173 = arith.addf %169, %172 : vector<8x8xf32>
    %c3_108 = arith.constant 3 : index
    %c0_109 = arith.constant 0 : index
    %c0_110 = arith.constant 0 : index
    %174 = vector.load %arg6[%c3_108, %c0_109, %c0_110] : memref<4x32x8xbf16, #tpu.memory_space<vmem>>, vector<1x32x8xbf16>
    %175 = vector.shape_cast %174 : vector<1x32x8xbf16> to vector<32x8xbf16>
    %cst_111 = arith.constant dense<0.000000e+00> : vector<8x8xf32>
    %176 = tpu.matmul %27, %175, %cst_111 {dimension_numbers = #tpu.dot_dimension_numbers<[1], [0], [0], [1], [0, 0, 1, 1], [], []>} : vector<8x32xbf16>, vector<32x8xbf16>, vector<8x8xf32> -> vector<8x8xf32>
    %c3_112 = arith.constant 3 : index
    %c0_113 = arith.constant 0 : index
    %c0_114 = arith.constant 0 : index
    %177 = vector.load %arg7[%c3_112, %c0_113, %c0_114] : memref<4x1x8xf32, #tpu.memory_space<vmem>>, vector<1x1x8xf32>
    %178 = vector.shape_cast %177 : vector<1x1x8xf32> to vector<1x8xf32>
    %179 = vector.broadcast %178 : vector<1x8xf32> to vector<8x8xf32>
    %180 = arith.addf %176, %179 : vector<8x8xf32>
    %c3_115 = arith.constant 3 : index
    %c0_116 = arith.constant 0 : index
    %c0_117 = arith.constant 0 : index
    %181 = vector.load %arg8[%c3_115, %c0_116, %c0_117] : memref<4x32x8xbf16, #tpu.memory_space<vmem>>, vector<1x32x8xbf16>
    %182 = vector.shape_cast %181 : vector<1x32x8xbf16> to vector<32x8xbf16>
    %cst_118 = arith.constant dense<0.000000e+00> : vector<8x8xf32>
    %183 = tpu.matmul %27, %182, %cst_118 {dimension_numbers = #tpu.dot_dimension_numbers<[1], [0], [0], [1], [0, 0, 1, 1], [], []>} : vector<8x32xbf16>, vector<32x8xbf16>, vector<8x8xf32> -> vector<8x8xf32>
    %c3_119 = arith.constant 3 : index
    %c0_120 = arith.constant 0 : index
    %c0_121 = arith.constant 0 : index
    %184 = vector.load %arg9[%c3_119, %c0_120, %c0_121] : memref<4x1x8xf32, #tpu.memory_space<vmem>>, vector<1x1x8xf32>
    %185 = vector.shape_cast %184 : vector<1x1x8xf32> to vector<1x8xf32>
    %186 = vector.broadcast %185 : vector<1x8xf32> to vector<8x8xf32>
    %187 = arith.addf %183, %186 : vector<8x8xf32>
    %188 = arith.truncf %173 : vector<8x8xf32> to vector<8x8xbf16>
    %189 = arith.truncf %180 : vector<8x8xf32> to vector<8x8xbf16>
    %cst_122 = arith.constant dense<0.000000e+00> : vector<8x8xf32>
    %190 = tpu.matmul %188, %189, %cst_122 {dimension_numbers = #tpu.dot_dimension_numbers<[1], [1], [0], [0], [0, 0, 1, 0], [], []>} : vector<8x8xbf16>, vector<8x8xbf16>, vector<8x8xf32> -> vector<8x8xf32>
    %cst_123 = arith.constant 0.353553385 : f32
    %191 = vector.broadcast %cst_123 : f32 to vector<8x8xf32>
    %192 = arith.mulf %190, %191 : vector<8x8xf32>
    %cst_124 = arith.constant 0xFF800000 : f32
    %193 = vector.broadcast %cst_124 : f32 to vector<8x8xf32>
    %194 = arith.select %30, %192, %193 : vector<8x8xi1>, vector<8x8xf32>
    %cst_125 = arith.constant dense<0xFF800000> : vector<8xf32>
    %195 = vector.multi_reduction <maximumf>, %194, %cst_125 [1] : vector<8x8xf32> to vector<8xf32>
    %196 = vector.shape_cast %195 : vector<8xf32> to vector<8x1xf32>
    %197 = vector.broadcast %196 : vector<8x1xf32> to vector<8x8xf32>
    %198 = arith.subf %194, %197 : vector<8x8xf32>
    %199 = math.exp %198 : vector<8x8xf32>
    %cst_126 = arith.constant dense<0.000000e+00> : vector<8xf32>
    %200 = vector.multi_reduction <add>, %199, %cst_126 [1] : vector<8x8xf32> to vector<8xf32>
    %201 = vector.shape_cast %200 : vector<8xf32> to vector<8x1xf32>
    %202 = vector.broadcast %201 : vector<8x1xf32> to vector<8x8xf32>
    %203 = arith.divf %199, %202 : vector<8x8xf32>
    %204 = arith.truncf %203 : vector<8x8xf32> to vector<8x8xbf16>
    %205 = arith.truncf %187 : vector<8x8xf32> to vector<8x8xbf16>
    %cst_127 = arith.constant dense<0.000000e+00> : vector<8x8xf32>
    %206 = tpu.matmul %204, %205, %cst_127 {dimension_numbers = #tpu.dot_dimension_numbers<[1], [0], [0], [1], [0, 0, 1, 1], [], []>} : vector<8x8xbf16>, vector<8x8xbf16>, vector<8x8xf32> -> vector<8x8xf32>
    %207 = arith.truncf %206 : vector<8x8xf32> to vector<8x8xbf16>
    %c3_128 = arith.constant 3 : index
    %c0_129 = arith.constant 0 : index
    %c0_130 = arith.constant 0 : index
    %208 = vector.load %arg10[%c3_128, %c0_129, %c0_130] : memref<4x8x32xbf16, #tpu.memory_space<vmem>>, vector<1x8x32xbf16>
    %209 = vector.shape_cast %208 : vector<1x8x32xbf16> to vector<8x32xbf16>
    %cst_131 = arith.constant dense<0.000000e+00> : vector<8x32xf32>
    %210 = tpu.matmul %207, %209, %cst_131 {dimension_numbers = #tpu.dot_dimension_numbers<[1], [0], [0], [1], [0, 0, 1, 1], [], []>} : vector<8x8xbf16>, vector<8x32xbf16>, vector<8x32xf32> -> vector<8x32xf32>
    %211 = arith.addf %166, %210 : vector<8x32xf32>
    %212 = arith.addf %2, %211 : vector<8x32xf32>
    %c0_132 = arith.constant 0 : index
    %c0_133 = arith.constant 0 : index
    %213 = vector.load %arg11[%c0_132, %c0_133] : memref<1x32xf32, #tpu.memory_space<vmem>>, vector<1x32xf32>
    %214 = vector.broadcast %213 : vector<1x32xf32> to vector<8x32xf32>
    %215 = arith.addf %212, %214 : vector<8x32xf32>
    %216 = arith.truncf %215 : vector<8x32xf32> to vector<8x32xbf16>
    %c0_134 = arith.constant 0 : index
    %c0_135 = arith.constant 0 : index
    %c0_136 = arith.constant 0 : index
    %217 = vector.load %arg12[%c0_134, %c0_135, %c0_136] : memref<1x8x32xbf16, #tpu.memory_space<vmem>>, vector<1x8x32xbf16>
    %218 = vector.shape_cast %217 : vector<1x8x32xbf16> to vector<8x32xbf16>
    %219 = vector.shape_cast %216 : vector<8x32xbf16> to vector<1x8x32xbf16>
    tpu.vector_store %arg12[%c0_134, %c0_135, %c0_136], %219 {strides = array<i32>} : memref<1x8x32xbf16, #tpu.memory_space<vmem>>, vector<1x8x32xbf16>,
    return
  }
  func.func @transform_0(%arg0: i32) -> (i32, i32, i32) {
    %c0_i32 = arith.constant 0 : i32
    %c0_i32_0 = arith.constant 0 : i32
    %c0_i32_1 = arith.constant 0 : i32
    return %arg0, %c0_i32, %c0_i32_0 : i32, i32, i32
  }
  func.func @transform_1(%arg0: i32) -> (i32, i32) {
    %c0_i32 = arith.constant 0 : i32
    %c0_i32_0 = arith.constant 0 : i32
    %c0_i32_1 = arith.constant 0 : i32
    return %c0_i32, %c0_i32_0 : i32, i32
  }
  func.func @transform_2(%arg0: i32) -> (i32, i32) {
    %c0_i32 = arith.constant 0 : i32
    %c0_i32_0 = arith.constant 0 : i32
    %c0_i32_1 = arith.constant 0 : i32
    return %c0_i32, %c0_i32_0 : i32, i32
  }
  func.func @transform_3(%arg0: i32) -> (i32, i32, i32) {
    %c0_i32 = arith.constant 0 : i32
    %c0_i32_0 = arith.constant 0 : i32
    %c0_i32_1 = arith.constant 0 : i32
    %c0_i32_2 = arith.constant 0 : i32
    return %c0_i32, %c0_i32_0, %c0_i32_1 : i32, i32, i32
  }
  func.func @transform_4(%arg0: i32) -> (i32, i32, i32) {
    %c0_i32 = arith.constant 0 : i32
    %c0_i32_0 = arith.constant 0 : i32
    %c0_i32_1 = arith.constant 0 : i32
    %c0_i32_2 = arith.constant 0 : i32
    return %c0_i32, %c0_i32_0, %c0_i32_1 : i32, i32, i32
  }
  func.func @transform_5(%arg0: i32) -> (i32, i32, i32) {
    %c0_i32 = arith.constant 0 : i32
    %c0_i32_0 = arith.constant 0 : i32
    %c0_i32_1 = arith.constant 0 : i32
    %c0_i32_2 = arith.constant 0 : i32
    return %c0_i32, %c0_i32_0, %c0_i32_1 : i32, i32, i32
  }
  func.func @transform_6(%arg0: i32) -> (i32, i32, i32) {
    %c0_i32 = arith.constant 0 : i32
    %c0_i32_0 = arith.constant 0 : i32
    %c0_i32_1 = arith.constant 0 : i32
    %c0_i32_2 = arith.constant 0 : i32
    return %c0_i32, %c0_i32_0, %c0_i32_1 : i32, i32, i32
  }
  func.func @transform_7(%arg0: i32) -> (i32, i32, i32) {
    %c0_i32 = arith.constant 0 : i32
    %c0_i32_0 = arith.constant 0 : i32
    %c0_i32_1 = arith.constant 0 : i32
    %c0_i32_2 = arith.constant 0 : i32
    return %c0_i32, %c0_i32_0, %c0_i32_1 : i32, i32, i32
  }
  func.func @transform_8(%arg0: i32) -> (i32, i32, i32) {
    %c0_i32 = arith.constant 0 : i32
    %c0_i32_0 = arith.constant 0 : i32
    %c0_i32_1 = arith.constant 0 : i32
    %c0_i32_2 = arith.constant 0 : i32
    return %c0_i32, %c0_i32_0, %c0_i32_1 : i32, i32, i32
  }
  func.func @transform_9(%arg0: i32) -> (i32, i32, i32) {
    %c0_i32 = arith.constant 0 : i32
    %c0_i32_0 = arith.constant 0 : i32
    %c0_i32_1 = arith.constant 0 : i32
    %c0_i32_2 = arith.constant 0 : i32
    return %c0_i32, %c0_i32_0, %c0_i32_1 : i32, i32, i32
  }
  func.func @transform_10(%arg0: i32) -> (i32, i32) {
    %c0_i32 = arith.constant 0 : i32
    %c0_i32_0 = arith.constant 0 : i32
    %c0_i32_1 = arith.constant 0 : i32
    return %c0_i32, %c0_i32_0 : i32, i32
  }
  func.func @transform_11(%arg0: i32) -> (i32, i32, i32) {
    %c0_i32 = arith.constant 0 : i32
    %c0_i32_0 = arith.constant 0 : i32
    %c0_i32_1 = arith.constant 0 : i32
    return %arg0, %c0_i32, %c0_i32_0 : i32, i32, i32
  }
}

module attributes {stable_mosaic.version = 11 : i64} {
  func.func @_ln_proj_norm_kernel(%arg0: i32, %arg1: memref<2x32xbf16, #tpu.memory_space<vmem>>, %arg2: memref<1x32xf32, #tpu.memory_space<vmem>>, %arg3: memref<1x32xf32, #tpu.memory_space<vmem>>, %arg4: memref<32x32xbf16, #tpu.memory_space<vmem>>, %arg5: memref<2x32xf32, #tpu.memory_space<vmem>>) attributes {dimension_semantics = [#tpu.dimension_semantics<arbitrary>], iteration_bounds = array<i64: 1>, scalar_prefetch = 0 : i64, scratch_operands = 0 : i64, tpu.core_type = #tpu.core_type<tc>, window_params = [{pipeline_mode = #tpu.pipeline_mode<synchronous>, transform_indices = @transform_0, window_bounds = array<i64: 2, 32>}, {pipeline_mode = #tpu.pipeline_mode<synchronous>, transform_indices = @transform_1, window_bounds = array<i64: 1, 32>}, {pipeline_mode = #tpu.pipeline_mode<synchronous>, transform_indices = @transform_2, window_bounds = array<i64: 1, 32>}, {pipeline_mode = #tpu.pipeline_mode<synchronous>, transform_indices = @transform_3, window_bounds = array<i64: 32, 32>}, {pipeline_mode = #tpu.pipeline_mode<synchronous>, transform_indices = @transform_4, window_bounds = array<i64: 2, 32>}]} {
    %c0 = arith.constant 0 : index
    %c0_0 = arith.constant 0 : index
    %0 = vector.load %arg1[%c0, %c0_0] : memref<2x32xbf16, #tpu.memory_space<vmem>>, vector<2x32xbf16>
    %1 = arith.extf %0 : vector<2x32xbf16> to vector<2x32xf32>
    %cst = arith.constant dense<0.000000e+00> : vector<2xf32>
    %2 = vector.multi_reduction <add>, %1, %cst [1] : vector<2x32xf32> to vector<2xf32>
    %3 = vector.shape_cast %2 : vector<2xf32> to vector<2x1xf32>
    %cst_1 = arith.constant 3.200000e+01 : f32
    %4 = vector.broadcast %cst_1 : f32 to vector<2x1xf32>
    %5 = arith.divf %3, %4 : vector<2x1xf32>
    %6 = vector.broadcast %5 : vector<2x1xf32> to vector<2x32xf32>
    %7 = arith.subf %1, %6 : vector<2x32xf32>
    %8 = arith.mulf %7, %7 : vector<2x32xf32>
    %cst_2 = arith.constant dense<0.000000e+00> : vector<2xf32>
    %9 = vector.multi_reduction <add>, %8, %cst_2 [1] : vector<2x32xf32> to vector<2xf32>
    %10 = vector.shape_cast %9 : vector<2xf32> to vector<2x1xf32>
    %cst_3 = arith.constant 3.200000e+01 : f32
    %11 = vector.broadcast %cst_3 : f32 to vector<2x1xf32>
    %12 = arith.divf %10, %11 : vector<2x1xf32>
    %13 = vector.broadcast %5 : vector<2x1xf32> to vector<2x32xf32>
    %14 = arith.subf %1, %13 : vector<2x32xf32>
    %cst_4 = arith.constant 9.99999974E-6 : f32
    %15 = vector.broadcast %cst_4 : f32 to vector<2x1xf32>
    %16 = arith.addf %12, %15 : vector<2x1xf32>
    %17 = math.rsqrt %16 : vector<2x1xf32>
    %18 = vector.broadcast %17 : vector<2x1xf32> to vector<2x32xf32>
    %19 = arith.mulf %14, %18 : vector<2x32xf32>
    %c0_5 = arith.constant 0 : index
    %c0_6 = arith.constant 0 : index
    %20 = vector.load %arg2[%c0_5, %c0_6] : memref<1x32xf32, #tpu.memory_space<vmem>>, vector<1x32xf32>
    %21 = vector.broadcast %20 : vector<1x32xf32> to vector<2x32xf32>
    %22 = arith.mulf %19, %21 : vector<2x32xf32>
    %c0_7 = arith.constant 0 : index
    %c0_8 = arith.constant 0 : index
    %23 = vector.load %arg3[%c0_7, %c0_8] : memref<1x32xf32, #tpu.memory_space<vmem>>, vector<1x32xf32>
    %24 = vector.broadcast %23 : vector<1x32xf32> to vector<2x32xf32>
    %25 = arith.addf %22, %24 : vector<2x32xf32>
    %26 = arith.truncf %25 : vector<2x32xf32> to vector<2x32xbf16>
    %c0_9 = arith.constant 0 : index
    %c0_10 = arith.constant 0 : index
    %27 = vector.load %arg4[%c0_9, %c0_10] : memref<32x32xbf16, #tpu.memory_space<vmem>>, vector<32x32xbf16>
    %cst_11 = arith.constant dense<0.000000e+00> : vector<2x32xf32>
    %28 = tpu.matmul %26, %27, %cst_11 {dimension_numbers = #tpu.dot_dimension_numbers<[1], [0], [0], [1], [0, 0, 1, 1], [], []>} : vector<2x32xbf16>, vector<32x32xbf16>, vector<2x32xf32> -> vector<2x32xf32>
    %29 = arith.mulf %28, %28 : vector<2x32xf32>
    %cst_12 = arith.constant dense<0.000000e+00> : vector<2xf32>
    %30 = vector.multi_reduction <add>, %29, %cst_12 [1] : vector<2x32xf32> to vector<2xf32>
    %31 = vector.shape_cast %30 : vector<2xf32> to vector<2x1xf32>
    %32 = math.rsqrt %31 : vector<2x1xf32>
    %33 = vector.broadcast %32 : vector<2x1xf32> to vector<2x32xf32>
    %34 = arith.mulf %28, %33 : vector<2x32xf32>
    %c0_13 = arith.constant 0 : index
    %c0_14 = arith.constant 0 : index
    %35 = vector.load %arg5[%c0_13, %c0_14] : memref<2x32xf32, #tpu.memory_space<vmem>>, vector<2x32xf32>
    tpu.vector_store %arg5[%c0_13, %c0_14], %34 {strides = array<i32>} : memref<2x32xf32, #tpu.memory_space<vmem>>, vector<2x32xf32>,
    return
  }
  func.func @transform_0(%arg0: i32) -> (i32, i32) {
    %c0_i32 = arith.constant 0 : i32
    %c0_i32_0 = arith.constant 0 : i32
    %c0_i32_1 = arith.constant 0 : i32
    return %c0_i32, %c0_i32_0 : i32, i32
  }
  func.func @transform_1(%arg0: i32) -> (i32, i32) {
    %c0_i32 = arith.constant 0 : i32
    %c0_i32_0 = arith.constant 0 : i32
    %c0_i32_1 = arith.constant 0 : i32
    return %c0_i32, %c0_i32_0 : i32, i32
  }
  func.func @transform_2(%arg0: i32) -> (i32, i32) {
    %c0_i32 = arith.constant 0 : i32
    %c0_i32_0 = arith.constant 0 : i32
    %c0_i32_1 = arith.constant 0 : i32
    return %c0_i32, %c0_i32_0 : i32, i32
  }
  func.func @transform_3(%arg0: i32) -> (i32, i32) {
    %c0_i32 = arith.constant 0 : i32
    %c0_i32_0 = arith.constant 0 : i32
    %c0_i32_1 = arith.constant 0 : i32
    return %c0_i32, %c0_i32_0 : i32, i32
  }
  func.func @transform_4(%arg0: i32) -> (i32, i32) {
    %c0_i32 = arith.constant 0 : i32
    %c0_i32_0 = arith.constant 0 : i32
    %c0_i32_1 = arith.constant 0 : i32
    return %c0_i32, %c0_i32_0 : i32, i32
  }
}

</mosaic_0001>

<bundles_post_ra>
// kernel: frozen_clip_text_embedder_forward.6
= control target key start
LH: loop header
LB: loop body
LE: loop exit
PB: predicated region body
PF: predicated region fallthrough
CT: control target
= control target key end

     0   :  { %vm31_vm0 = vcmask 261120   ;;  %v380_v16 = vmov 0.0   ;;  %vm381_vm1 = vmmov 0   ;;  %vm284_vm2 = vcmask 257024   ;;  %s488_s0 = inlined_call_operand.vmem [shape: bf16[16,32], index: 0, kind: input, shape index: {}]   ;;  %s489_s3 = inlined_call_operand.vmem [shape: bf16[32,128], index: 3, kind: input, shape index: {}]   ;;  %s490_s1 = inlined_call_operand.vmem [shape: f32[1,32], index: 1, kind: input, shape index: {}]   ;;  %s491_s2 = inlined_call_operand.vmem [shape: f32[1,32], index: 2, kind: input, shape index: {}]   ;;  %s492_s5 = inlined_call_operand.vmem [shape: bf16[128,32], index: 5, kind: input, shape index: {}]   ;;  %s493_s4 = inlined_call_operand.vmem [shape: f32[1,128], index: 4, kind: input, shape index: {}]   ;;  %s494_s6 = inlined_call_operand.vmem [shape: f32[1,32], index: 6, kind: input, shape index: {}]   ;;  %s495_s7 = inlined_call_operand.vmem [shape: bf16[16,32], index: 7, kind: output, shape index: {}]  }
   0x1   :  { %v313_v0 = vld [vmem:[%s488_s0] sm:$0xff]   ;;  %328 = vmatprep.subr.bf16.mxu0 %v380_v16  ;;  %336 = vmatprep.subr.bf16.mxu1 %v380_v16  ;;  %v359_v17 = vld [vmem:[%s489_s3 + $0x8] sm:$0xff]   ;;  %v362_v37 = vld [vmem:[%s492_s5 + $0x10] sm:$0xff]  }
   0x2   :  { %v425_v1 = vunpack.c.l.bf16 %v313_v0  ;;  %v427_v2 = vunpack.c.h.bf16 %v313_v0  ;;  %v358_v15 = vld [vmem:[%s489_s3] sm:$0xff]   ;;  %332 = vmatprep.mubr.msk.bf16.mxu0 %vm381_vm1, %v380_v16  ;;  %352 = vmatprep.mubr.msk.bf16.mxu1 %vm381_vm1, %v380_v16  ;;  %v361_v36 = vld [vmem:[%s492_s5 + $0x8] sm:$0xff]   ;;  %v363_v38 = vld [vmem:[%s492_s5 + $0x18] sm:$0xff]  }
   0x3   :  { %329 = vmatpush3.bf16.msra.mxu0 %v358_v15  ;;  %v291_v26 = vld [vmem:[%s490_s1] ss:$0 sm:$0xff]  ;;  %v365_v40 = vld [vmem:[%s492_s5 + $0x28] sm:$0xff]   ;;  %v366_v41 = vld [vmem:[%s492_s5 + $0x30] sm:$0xff]  }
   0x4   :  { %v32_v3 = vsel %vm31_vm0, %v425_v1, 0.0  ;;  %v35_v4 = vsel %vm31_vm0, %v427_v2, 0.0  ;;  %330 = vmatprep.subr.bf16.mxu0 %v380_v16  ;;  %v292_v30 = vld [vmem:[%s491_s2] ss:$0 sm:$0xff]  ;;  %v367_v42 = vld [vmem:[%s492_s5 + $0x38] sm:$0xff]  }
   0x5   :  { %33 = vadd.xlane.f32.xlu0 %v32_v3  ;;  %v360_v35 = vld [vmem:[%s492_s5] sm:$0xff]  }
   0x6   :  { %337 = vmatpush3.bf16.msra.mxu1 %v360_v35  ;;  %v364_v39 = vld [vmem:[%s492_s5 + $0x20] sm:$0xff]  }
   0x7   :  { %331 = vmatpush3.bf16.msra.mxu0 %v359_v17  ;;  %338 = vmatprep.subr.bf16.mxu1 %v380_v16  ;;  %v293_v43 = vld [vmem:[%s493_s4] ss:$0 sm:$0xff] }
   0x8   :  { %v299_v63 = vld [vmem:[%s494_s6] ss:$0 sm:$0xff] }
   0x9   :  { %36 = vadd.xlane.f32.xlu0 %v35_v4 }
   0xa   :  { %339 = vmatpush3.bf16.msra.mxu1 %v361_v36 }
   0xb   :  { %340 = vmatprep.subr.bf16.mxu1 %v380_v16 }
   0xe   :  { %341 = vmatpush3.bf16.msra.mxu1 %v362_v37 }
   0xf   :  { %342 = vmatprep.subr.bf16.mxu1 %v380_v16 }
  0x12   :  { %343 = vmatpush3.bf16.msra.mxu1 %v363_v38 }
  0x13   :  { %344 = vmatprep.subr.bf16.mxu1 %v380_v16 }
  0x16   :  { %345 = vmatpush3.bf16.msra.mxu1 %v364_v39 }
  0x17   :  { %346 = vmatprep.subr.bf16.mxu1 %v380_v16 }
  0x1a   :  { %347 = vmatpush3.bf16.msra.mxu1 %v365_v40 }
  0x1b   :  { %348 = vmatprep.subr.bf16.mxu1 %v380_v16 }
  0x1e   :  { %349 = vmatpush3.bf16.msra.mxu1 %v366_v41 }
  0x1f   :  { %350 = vmatprep.subr.bf16.mxu1 %v380_v16 }
  0x22   :  { %351 = vmatpush3.bf16.msra.mxu1 %v367_v42 }
  0x92   :  { %v34_v5 = vpop.xlane.xlu0 %33 }
  0x93   :  { %v39_v6 = vmul.f32 0.03125, %v34_v5 }
  0x95   :  { %v41_v7 = vsub.f32 %v425_v1, %v39_v6 }
  0x96   :  { %v37_v8 = vpop.xlane.xlu0 %36 }
  0x97   :  { %v40_v9 = vmul.f32 0.03125, %v37_v8  ;;  %v43_v10 = vmul.f32 %v41_v7, %v41_v7 }
  0x99   :  { %v42_v11 = vsub.f32 %v427_v2, %v40_v9  ;;  %v45_v12 = vsel %vm31_vm0, %v43_v10, 0.0 }
  0x9a   :  { %46 = vadd.xlane.f32.xlu1 %v45_v12 }
  0x9b   :  { %v44_v13 = vmul.f32 %v42_v11, %v42_v11 }
  0x9d   :  { %v48_v14 = vsel %vm31_vm0, %v44_v13, 0.0 }
  0x9e   :  { %49 = vadd.xlane.f32.xlu1 %v48_v14 }
 0x127   :  { %v47_v18 = vpop.xlane.xlu1 %46 }
 0x128   :  { %v51_v19 = vmul.f32 0.03125, %v47_v18 }
 0x12a   :  { %v53_v20 = vadd.f32 1e-05, %v51_v19 }
 0x12b   :  { %v50_v21 = vpop.xlane.xlu1 %49 }
 0x12c   :  { %368 = vrsqrt.f32 %v53_v20  ;;  %v52_v22 = vmul.f32 0.03125, %v50_v21 }
 0x12e   :  { %v54_v23 = vadd.f32 1e-05, %v52_v22 }
 0x130   :  { %370 = vrsqrt.f32 %v54_v23 }
 0x136   :  { %v369_v24 = vpop.eup %368 }
 0x137   :  { %v57_v25 = vmul.f32 %v369_v24, %v41_v7 }
 0x139   :  { %v66_v29 = vmul.f32 %v291_v26, %v57_v25 }
 0x13a   :  { %v371_v27 = vpop.eup %370 }
 0x13b   :  { %v58_v28 = vmul.f32 %v371_v27, %v42_v11  ;;  %v75_v32 = vadd.f32 %v292_v30, %v66_v29 }
 0x13d   :  { %v67_v31 = vmul.f32 %v291_v26, %v58_v28 }
 0x13f   :  { %v76_v33 = vadd.f32 %v292_v30, %v67_v31 }
 0x141   :  { %v77_v34 = vpack.c.bf16 %v76_v33, %v75_v32 }
 0x143   :  { %333 = vmatmul.mubr.msk.bf16.vlgmr.msra.gmra.mrb[0].mxu0 %vm31_vm0, %v77_v34 }
 0x216   :  { %v138_v44 = vpop.f32.mrb[0].mxu0 }
 0x217   :  { %v139_v45 = vadd.f32 %v293_v43, %v138_v44  ;;  %v334_v46 = vpop.f32.mrb[1].mxu0 }
 0x218   :  { %v141_v47 = vpop.f32.mrb[2].mxu0 }
 0x219   :  { %v297_v48 = vmul.f32 -1.702, %v139_v45  ;;  %v142_v49 = vadd.f32 %v293_v43, %v141_v47  ;;  %v335_v50 = vpop.f32.mrb[3].mxu0 }
 0x21b   :  { %v149_v51 = vmul.f32 1.442695, %v297_v48  ;;  %v298_v52 = vmul.f32 -1.702, %v142_v49 }
 0x21d   :  { %372 = vpow2.f32 %v149_v51  ;;  %v151_v53 = vmul.f32 1.442695, %v298_v52 }
 0x21f   :  { %374 = vpow2.f32 %v151_v53 }
 0x227   :  { %v373_v54 = vpop.eup %372 }
 0x228   :  { %v153_v55 = vadd.f32 1.0, %v373_v54 }
 0x229   :  { %v375_v56 = vpop.eup %374 }
 0x22a   :  { %376 = vrcp.f32 %v153_v55  ;;  %v154_v57 = vadd.f32 1.0, %v375_v56 }
 0x22c   :  { %378 = vrcp.f32 %v154_v57 }
 0x234   :  { %v377_v58 = vpop.eup %376 }
 0x235   :  { %v159_v60 = vmul.f32 %v377_v58, %v139_v45 }
 0x236   :  { %v379_v59 = vpop.eup %378 }
 0x237   :  { %v160_v61 = vmul.f32 %v379_v59, %v142_v49 }
 0x239   :  { %v161_v62 = vpack.c.bf16 %v160_v61, %v159_v60 }
 0x23b   :  { %353 = vmatmul.mubr.bf16.vlgmr.msra.gmra.mrb[0].mxu1 %v161_v62 }
 0x30e   :  { %v267_v0 = vpop.f32.mrb[0].mxu1 }
 0x30f   :  { %v268_v3 = vadd.f32 %v299_v63, %v267_v0  ;;  %v354_v4 = vpop.f32.mrb[1].mxu1 }
 0x310   :  { %v270_v5 = vpop.f32.mrb[2].mxu1 }
 0x311   :  { %v274_v6 = vadd.f32 %v425_v1, %v268_v3  ;;  %v271_v7 = vadd.f32 %v299_v63, %v270_v5  ;;  %v355_v8 = vpop.f32.mrb[3].mxu1 }
 0x313   :  { %v310_v9 = vpack.c.bf16 %v274_v6, %v274_v6  ;;  %v275_v10 = vadd.f32 %v427_v2, %v271_v7 }
 0x315   :  { %285 = vst.msk [vmem:[%s495_s7] sm:$0xf] %vm284_vm2, %v310_v9  ;;  %v311_v11 = vpack.c.bf16 %v275_v10, %v275_v10 }
 0x317   :  { %286 = vst.msk [vmem:[%s495_s7 + $0x4] sm:$0xf] %vm284_vm2, %v311_v11 }

// kernel: frozen_clip_text_embedder_forward.9
= control target key start
LH: loop header
LB: loop body
LE: loop exit
PB: predicated region body
PF: predicated region fallthrough
CT: control target
= control target key end

     0   :  { %vm21_vm0 = vcmask 254976   ;;  %s242_s0 = inlined_call_operand.vmem [shape: bf16[2,32], index: 0, kind: input, shape index: {}]   ;;  %s243_s1 = inlined_call_operand.vmem [shape: f32[1,32], index: 1, kind: input, shape index: {}]   ;;  %s244_s2 = inlined_call_operand.vmem [shape: f32[1,32], index: 2, kind: input, shape index: {}]   ;;  %s245_s3 = inlined_call_operand.vmem [shape: bf16[32,32], index: 3, kind: input, shape index: {}]   ;;  %s246_s4 = inlined_call_operand.hbm [shape: f32[2,32], index: 4, kind: output, shape index: {}]  }
   0x1   :  { %v19_v0 = vld [vmem:[%s242_s0] sm:$0x1] }
   0x2   :  { %v20_v1 = vunpack.c.l.bf16 %v19_v0 }
   0x3   :  { %9 = vsyncpa [#allocation3], 0  ;;  %v153_v8 = vld [vmem:[%s245_s3] sm:$0xff]   ;;  %v183_v9 = vmov 0.0   ;;  %v154_v10 = vld [vmem:[%s245_s3 + $0x8] sm:$0xff]   ;;  %vm184_vm1 = vmmov 0  }
   0x4   :  { %v22_v2 = vsel %vm21_vm0, %v20_v1, 0.0  ;;  %142 = vmatprep.subr.bf16.mxu0 %v183_v9  ;;  %146 = vmatprep.mubr.msk.bf16.mxu0 %vm184_vm1, %v183_v9  ;;  %v134_v15 = vld [vmem:[%s243_s1] ss:$0 sm:$0xff]  ;;  %vm69_vm2 = vcmask 261120   ;;  %s185_s1 = smov [#allocation2]  }
   0x5   :  { %23 = vadd.xlane.f32.xlu0 %v22_v2  ;;  %143 = vmatpush3.bf16.msra.mxu0 %v153_v8  ;;  %v135_v17 = vld [vmem:[%s244_s2] ss:$0 sm:$0xff]  ;;  %s126_s3 = sshll.u32 %s185_s1, 4  ;;  %s127_s3 = int_to_ptr.vmem [resolvable:$true] %s126_s3 }
   0x6   :  { %144 = vmatprep.subr.bf16.mxu0 %v183_v9  ;;  %s159_s2 = scalar_lea.vmem %s127_s3, 32  ;;  %p164_p1 = scmp.lt.s32.totalorder %s127_s3, %s127_s3 }
   0x7   :  { %p160_p0 = scmp.ne.s32.totalorder %s127_s3, %s159_s2  ;;  %p165_p2 = scmp.lt.s32.totalorder %s159_s2, %s159_s2 }
   0x9   :  { %145 = vmatpush3.bf16.msra.mxu0 %v154_v10  ;;  %p166_p3 = por %p165_p2, %p164_p1 }
   0xb   :  { %p167_p4 = pnand %p166_p3, %p160_p0 }
  0x92   :  { %v24_v3 = vpop.xlane.xlu0 %23 }
  0x93   :  { %v26_v4 = vmul.f32 0.03125, %v24_v3 }
  0x95   :  { %v27_v5 = vsub.f32 %v20_v1, %v26_v4 }
  0x97   :  { %v28_v6 = vmul.f32 %v27_v5, %v27_v5 }
  0x99   :  { %v29_v7 = vsel %vm21_vm0, %v28_v6, 0.0 }
  0x9a   :  { %30 = vadd.xlane.f32.xlu0 %v29_v7 }
 0x127   :  { %v31_v11 = vpop.xlane.xlu0 %30 }
 0x128   :  { %v32_v12 = vmul.f32 0.03125, %v31_v11 }
 0x12a   :  { %v33_v13 = vadd.f32 1e-05, %v32_v12 }
 0x12c   :  { %155 = vrsqrt.f32 %v33_v13 }
 0x136   :  { %v156_v14 = vpop.eup %155 }
 0x137   :  { %v35_v16 = vmul.f32 %v156_v14, %v27_v5 }
 0x139   :  { %v43_v18 = vmul.f32 %v134_v15, %v35_v16 }
 0x13b   :  { %v51_v19 = vadd.f32 %v135_v17, %v43_v18 }
 0x13d   :  { %v52_v20 = vpack.c.bf16 %v51_v19, %v51_v19 }
 0x13f   :  { %147 = vmatmul.mubr.msk.bf16.vlgmr.msra.gmra.mrb[0].mxu0 %vm69_vm2, %v52_v20 }
 0x212   :  { %v107_v21 = vpop.f32.mrb[0].mxu0 }
 0x213   :  { %v148_v22 = vpop.f32.mrb[1].mxu0  ;;  %v113_v23 = vmul.f32 %v107_v21, %v107_v21 }
 0x214   :  { %v110_v24 = vpop.f32.mrb[2].mxu0 }
 0x215   :  { %v149_v25 = vpop.f32.mrb[3].mxu0  ;;  %v114_v26 = vsel %vm21_vm0, %v113_v23, 0.0 }
 0x216   :  { %115 = vadd.xlane.f32.xlu1 %v114_v26 }
 0x2a3   :  { %v116_v27 = vpop.xlane.xlu1 %115 }
 0x2a4   :  { %157 = vrsqrt.f32 %v116_v27 }
 0x2ae   :  { %v158_v28 = vpop.eup %157 }
 0x2af   :  { %v118_v29 = vmul.f32 %v158_v28, %v107_v21 }
 0x2b1   :  { %119 = vst.msk [vmem:[#allocation2] sm:$0x3] %vm21_vm0, %v118_v29 }
 0x2b2   :  { %170 = shalt.err (!%p167_p4)
}
 0x2b3   :  { %s171_s26 = scalar_lea.hbm %s246_s4, 32 }
 0x2b4   :  { %p172_p5 = scmp.ne.s32.totalorder %s246_s4, %s171_s26  ;;  %p175_p6 = scmp.lt.u32.totalorder %s171_s26, %s246_s4 }
 0x2b6   :  { %p177_p7 = pnand %p175_p6, %p172_p5 }
 0x2b8   :  { %180 = shalt.err (!%p177_p7)
}
 0x2b9   :  { %129 = dma.vmem_to_hbm [thread:$0]  %s127_s3, 32, %s246_s4, [#allocation3]  }
 0x2ba   :  { %181 = dma.done.wait [#allocation3], 32  }
 0x2bb   :  { %182 = vsyncadd [#allocation3], 4294967264 }
 0x2bc   :  { %133 = vsyncpa [#allocation3], 1 }

// kernel: frozen_clip_text_embedder_forward.5
= control target key start
LH: loop header
LB: loop body
LE: loop exit
PB: predicated region body
PF: predicated region fallthrough
CT: control target
= control target key end

     0   :  { %s2369_s17 = smov 0   ;;  %s2692_s0 = inlined_call_operand.vmem [shape: bf16[2,8,32], index: 0, kind: input, shape index: {}]   ;;  %s2693_s1 = inlined_call_operand.vmem [shape: f32[1,32], index: 1, kind: input, shape index: {}]   ;;  %s2694_s2 = inlined_call_operand.vmem [shape: f32[1,32], index: 2, kind: input, shape index: {}]   ;;  %s2695_s3 = inlined_call_operand.vmem [shape: bf16[4,32,8], index: 3, kind: input, shape index: {}]   ;;  %s2696_s4 = inlined_call_operand.vmem [shape: f32[4,1,8], index: 4, kind: input, shape index: {}]   ;;  %s2697_s5 = inlined_call_operand.vmem [shape: bf16[4,32,8], index: 5, kind: input, shape index: {}]   ;;  %s2698_s6 = inlined_call_operand.vmem [shape: f32[4,1,8], index: 6, kind: input, shape index: {}]   ;;  %s2699_s7 = inlined_call_operand.vmem [shape: bf16[4,32,8], index: 7, kind: input, shape index: {}]   ;;  %s2700_s8 = inlined_call_operand.vmem [shape: f32[4,1,8], index: 8, kind: input, shape index: {}]   ;;  %s2701_s9 = inlined_call_operand.vmem [shape: bf16[4,8,32], index: 9, kind: input, shape index: {}]   ;;  %s2702_s10 = inlined_call_operand.vmem [shape: f32[1,32], index: 10, kind: input, shape index: {}]   ;;  %s2703_s11 = inlined_call_operand.vmem [shape: bf16[2,8,32], index: 11, kind: output, shape index: {}]  }
   0x1 LB: > { %s1899_s18 = sadd.s32 4294967295, %s2305_s17   ;;  %p1903_p0 = scmp.ge.s32.totalorder %s2305_s17, 1  ;;  %s2305_s17 = sphi %s2369_s17, %s21_s17  }
   0x2   : > { %p336_p1 = scmp.lt.s32.totalorder %s2305_s17, 3 }
   0x4   : > { %p337_p2 = pnand %p1903_p0, %p336_p1 }
   0x5   : > { %p374_p3 = scmp.lt.s32.totalorder (!%p337_p2), %s1899_s18, 1  ;;  %vm385_vm0 = vcmask (!%p337_p2), 261120   ;;  %v2257_v8 = vld [vmem:[%s2695_s3] sm:$0xff] (!%p337_p2)   ;;  %v2307_v10 = vmov (!%p337_p2), 0.0   ;;  %v2259_v11 = vld [vmem:[%s2695_s3 + $0x8] sm:$0xff] (!%p337_p2)   ;;  %vm2308_vm1 = vmmov (!%p337_p2), 0   ;;  %v417_v52 = vlaneseq (!%p337_p2) }
   0x6   : > { %340 = sbr.rel (%p337_p2) target bundleno = 4233 (0x1089), region = 64  ;;  %v2258_v9 = vld [vmem:[%s2697_s5] sm:$0xff] (!%p337_p2)   ;;  %2079 = vmatprep.subr.bf16.mxu0 (!%p337_p2), %v2307_v10  ;;  %2087 = vmatprep.subr.bf16.mxu1 (!%p337_p2), %v2307_v10  ;;  %v2260_v12 = vld [vmem:[%s2697_s5 + $0x8] sm:$0xff] (!%p337_p2)   ;;  %vm616_vm2 = vcmask (!%p337_p2), 64512   ;;  %vm681_vm3 = vcmask (!%p337_p2), 1043456   ;;  %v2263_v44 = vld [vmem:[%s2695_s3 + $0x10] sm:$0xff] (!%p337_p2)  }
   0x7   : > { %2080 = vmatpush3.bf16.msra.mxu0 (!%p337_p2), %v2257_v8  ;;  %2088 = vmatpush3.bf16.msra.mxu1 (!%p337_p2), %v2258_v9  ;;  %v1906_v17 = vld [vmem:[%s2693_s1] ss:$0 sm:$0xff] (!%p337_p2)  ;;  %v2262_v24 = vld [vmem:[%s2699_s7 + $0x8] sm:$0xff] (!%p337_p2)   ;;  %v2264_v49 = vld [vmem:[%s2695_s3 + $0x18] sm:$0xff] (!%p337_p2)   ;;  %v2481_v53 = vshrl.u32 (!%p337_p2), %v417_v52, 7  ;;  %v2483_v54 = vand.u32 (!%p337_p2), 127, %v417_v52 }
   0x8   : > { %2081 = vmatprep.subr.bf16.mxu0 (!%p337_p2), %v2307_v10  ;;  %2089 = vmatprep.subr.bf16.mxu1 (!%p337_p2), %v2307_v10  ;;  %v1907_v19 = vld [vmem:[%s2694_s2] ss:$0 sm:$0xff] (!%p337_p2)  ;;  %v2265_v50 = vld [vmem:[%s2699_s7 + $0x10] sm:$0xff] (!%p337_p2)   ;;  %v2266_v51 = vld [vmem:[%s2699_s7 + $0x18] sm:$0xff] (!%p337_p2)   ;;  %vm1844_vm5 = vcmask (!%p337_p2), 257024  }
   0x9   : > { %2083 = vmatprep.mubr.msk.bf16.mxu0 (!%p337_p2), %vm2308_vm1, %v2307_v10  ;;  %2091 = vmatprep.mubr.msk.bf16.mxu1 (!%p337_p2), %vm2308_vm1, %v2307_v10  ;;  %v2261_v22 = vld [vmem:[%s2699_s7] sm:$0xff] (!%p337_p2)   ;;  %vm421_vm4 = vcmp.le.s32.totalorder (!%p337_p2), %v2483_v54, %v2481_v53 }
   0xa   : > { %v1912_v25 = vld [vmem:[%s2698_s6] ss:$0 sm:$0xff] (!%p337_p2) }
   0xb   : > { %2082 = vmatpush3.bf16.msra.mxu0 (!%p337_p2), %v2259_v11  ;;  %2090 = vmatpush3.bf16.msra.mxu1 (!%p337_p2), %v2260_v12  ;;  %v1908_v36 = vld [vmem:[%s2696_s4] ss:$0 sm:$0xff] (!%p337_p2) }
   0xc   : > { %2095 = vmatprep.subr.bf16.mxu0 (!%p337_p2), %v2307_v10  ;;  %2103 = vmatprep.subr.bf16.mxu1 (!%p337_p2), %v2307_v10  ;;  %v1916_v38 = vld [vmem:[%s2700_s8] ss:$0 sm:$0xff] (!%p337_p2) }
   0xd   : > { %s2705_s18 = smov (!%p374_p3, %s1899_s18), 1 }
   0xe   : > { %s1904_s19 = sshll.u32 %s2705_s18, 2 }
   0xf   : > { %s377_s22 = scalar_lea.vmem %s2692_s0, %s1904_s19  ;;  %s381_s12 = scalar_lea.vmem %s2703_s11, %s1904_s19 }
  0x10   : > { %v383_v0 = vld [vmem:[%s377_s22] sm:$0xf] }
  0x11   : > { %v2385_v1 = vunpack.c.l.bf16 %v383_v0 }
  0x13   : > { %v386_v2 = vsel %vm385_vm0, %v2385_v1, 0.0 }
  0x14   : > { %387 = vadd.xlane.f32.xlu0 %v386_v2 }
  0xa1   : > { %v388_v3 = vpop.xlane.xlu0 %387 }
  0xa2   : > { %v390_v4 = vmul.f32 0.03125, %v388_v3  ;;  %v1945_v3 = vld [vmem:[%s2700_s8 + $0x1] ss:$0 sm:$0xff] }
  0xa4   : > { %v391_v5 = vsub.f32 %v2385_v1, %v390_v4 }
  0xa6   : > { %v392_v6 = vmul.f32 %v391_v5, %v391_v5 }
  0xa8   : > { %v393_v7 = vsel %vm385_vm0, %v392_v6, 0.0 }
  0xa9   : > { %394 = vadd.xlane.f32.xlu0 %v393_v7 }
 0x136   : > { %v395_v13 = vpop.xlane.xlu0 %394 }
 0x137   : > { %v396_v14 = vmul.f32 0.03125, %v395_v13 }
 0x139   : > { %v397_v15 = vadd.f32 1e-05, %v396_v14 }
 0x13b   : > { %2281 = vrsqrt.f32 %v397_v15 }
 0x145   : > { %v2282_v16 = vpop.eup %2281 }
 0x146   : > { %v399_v18 = vmul.f32 %v2282_v16, %v391_v5 }
 0x148   : > { %v407_v20 = vmul.f32 %v1906_v17, %v399_v18 }
 0x14a   : > { %v415_v21 = vadd.f32 %v1907_v19, %v407_v20  ;;  %v2267_v20 = vld [vmem:[%s2697_s5 + $0x10] sm:$0xff]  }
 0x14c   : > { %v2422_v23 = vpack.c.bf16 %v415_v21, %v415_v21 }
 0x14e   : > { %2084 = vmatmul.mubr.msk.bf16.vlgmr.msra.gmra.mrb[0].mxu0 %vm385_vm0, %v2422_v23  ;;  %2092 = vmatmul.mubr.msk.bf16.vlgmr.msra.gmra.mrb[0].mxu1 %vm385_vm0, %v2422_v23 }
 0x14f   : > { %2096 = vmatpush3.bf16.msra.mxu0 %v2261_v22  ;;  %2099 = vmatprep.mubr.msk.bf16.mxu0 %vm2308_vm1, %v2307_v10  ;;  %v2268_v22 = vld [vmem:[%s2697_s5 + $0x18] sm:$0xff]  }
 0x150   : > { %2097 = vmatprep.subr.bf16.mxu0 %v2307_v10  ;;  %2105 = vmatprep.mubr.msk.bf16.mxu1 %vm2308_vm1, %v2307_v10 }
 0x153   : > { %2098 = vmatpush3.bf16.msra.mxu0 %v2262_v24 }
 0x154   : > { %2109 = vmatprep.subr.bf16.mxu0 %v2307_v10 }
 0x156   : > { %2100 = vmatmul.mubr.msk.bf16.vlgmr.msra.gmra.mrb[4].mxu0 %vm385_vm0, %v2422_v23 }
 0x157   : > { %2111 = vmatprep.mubr.msk.bf16.mxu0 %vm2308_vm1, %v2307_v10 }
 0x221   : > { %v482_v26 = vpop.f32.mrb[0].mxu0  ;;  %v545_v27 = vpop.f32.mrb[0].mxu1 }
 0x222   : > { %v546_v28 = vadd.f32 %v1912_v25, %v545_v27  ;;  %v2085_v29 = vpop.f32.mrb[1].mxu0  ;;  %v2093_v30 = vpop.f32.mrb[1].mxu1  ;;  %v483_v39 = vadd.f32 %v1908_v36, %v482_v26 }
 0x223   : > { %v485_v31 = vpop.f32.mrb[2].mxu0  ;;  %v548_v32 = vpop.f32.mrb[2].mxu1 }
 0x224   : > { %v615_v33 = vpack.c.bf16 %v546_v28, %v546_v28  ;;  %v2086_v34 = vpop.f32.mrb[3].mxu0  ;;  %v2094_v35 = vpop.f32.mrb[3].mxu1  ;;  %v614_v45 = vpack.c.bf16 %v483_v39, %v483_v39  ;;  %v1936_v28 = vld [vmem:[%s2698_s6 + $0x1] ss:$0 sm:$0xff] }
 0x225   : > { %v1927_v35 = vld [vmem:[%s2696_s4 + $0x1] ss:$0 sm:$0xff] }
 0x226   : > { %v621_v37 = vsel %vm616_vm2, %v615_v33, 0 }
 0x227   : > { %2104 = vmatpush3.bf16.xpose.msra.mxu1 %v621_v37 }
 0x228   : > { %2115 = vmatprep.subr.bf16.mxu1 %v2307_v10 }
 0x229   : > { %v608_v40 = vpop.f32.mrb[4].mxu0 }
 0x22a   : > { %v609_v41 = vadd.f32 %v1916_v38, %v608_v40  ;;  %v2101_v42 = vpop.f32.mrb[5].mxu0 }
 0x22b   : > { %v611_v43 = vpop.f32.mrb[6].mxu0 }
 0x22c   : > { %v677_v46 = vpack.c.bf16 %v609_v41, %v609_v41  ;;  %v2102_v47 = vpop.f32.mrb[7].mxu0 }
 0x22e   : > { %v683_v48 = vsel %vm681_vm3, %v677_v46, 0  ;;  %2106 = vmatmul.mubr.msk.bf16.vlgmr.msra.gmra.mrb[4].mxu1 %vm616_vm2, %v614_v45 }
 0x22f   : > { %2110 = vmatpush3.bf16.msra.mxu0 %v683_v48  ;;  %2116 = vmatpush3.bf16.msra.mxu1 %v2263_v44 }
 0x230   : > { %2117 = vmatprep.subr.bf16.mxu1 %v2307_v10  ;;  %2119 = vmatprep.mubr.msk.bf16.mxu1 %vm2308_vm1, %v2307_v10 }
 0x231   : > { %2123 = vmatprep.subr.bf16.mxu0 %v2307_v10 }
 0x233   : > { %2118 = vmatpush3.bf16.msra.mxu1 %v2264_v49 }
 0x234   : > { %2131 = vmatprep.subr.bf16.mxu1 %v2307_v10 }
 0x236   : > { %2120 = vmatmul.mubr.msk.bf16.vlgmr.msra.gmra.mrb[8].mxu1 %vm385_vm0, %v2422_v23 }
 0x237   : > { %2132 = vmatpush3.bf16.msra.mxu1 %v2265_v50  ;;  %2135 = vmatprep.mubr.msk.bf16.mxu1 %vm2308_vm1, %v2307_v10 }
 0x238   : > { %2133 = vmatprep.subr.bf16.mxu1 %v2307_v10 }
 0x23b   : > { %2134 = vmatpush3.bf16.msra.mxu1 %v2266_v51  ;;  %v1951_v51 = vld [vmem:[%s2701_s9 + $0x4] sm:$0xf] }
 0x23c   : > { %2145 = vmatprep.subr.bf16.mxu1 %v2307_v10  ;;  %v1038_v52 = vsel %vm681_vm3, %v1951_v51, 0 }
 0x23e   : > { %2136 = vmatmul.mubr.msk.bf16.vlgmr.msra.gmra.mrb[12].mxu1 %vm385_vm0, %v2422_v23 }
 0x23f   : > { %2147 = vmatprep.mubr.msk.bf16.mxu1 %vm2308_vm1, %v2307_v10 }
 0x301   : > { %v657_v55 = vpop.f32.mrb[4].mxu1 }
 0x302   : > { %v663_v56 = vmul.f32 0.35355338, %v657_v55  ;;  %v2107_v57 = vpop.f32.mrb[5].mxu1 }
 0x303   : > { %v660_v58 = vpop.f32.mrb[6].mxu1  ;;  %v726_v57 = vld [vmem:[%s2701_s9] sm:$0xf] }
 0x304   : > { %v2108_v59 = vpop.f32.mrb[7].mxu1  ;;  %v664_v60 = vsel %vm421_vm4, %v663_v56, -inf }
 0x305   : > { %v665_v61 = vsel %vm616_vm2, %v664_v60, -inf }
 0x306   : > { %666 = vmax.xlane.f32.xlu1 %v665_v61  ;;  %v2269_v61 = vld [vmem:[%s2697_s5 + $0x20] sm:$0xff]  }
 0x309   : > { %v786_v62 = vpop.f32.mrb[8].mxu1 }
 0x30a   : > { %v2121_v63 = vpop.f32.mrb[9].mxu1  ;;  %v787_v37 = vadd.f32 %v1927_v35, %v786_v62 }
 0x30b   : > { %v789_v0 = vpop.f32.mrb[10].mxu1  ;;  %v2270_v63 = vld [vmem:[%s2697_s5 + $0x28] sm:$0xff]  }
 0x30c   : > { %v2122_v2 = vpop.f32.mrb[11].mxu1  ;;  %v922_v38 = vpack.c.bf16 %v787_v37, %v787_v37 }
 0x30d   : > { %v2271_v2 = vld [vmem:[%s2695_s3 + $0x20] sm:$0xff]  }
 0x311   : > { %v916_v4 = vpop.f32.mrb[12].mxu1 }
 0x312   : > { %v917_v5 = vadd.f32 %v1945_v3, %v916_v4  ;;  %v2137_v6 = vpop.f32.mrb[13].mxu1 }
 0x313   : > { %v919_v7 = vpop.f32.mrb[14].mxu1 }
 0x314   : > { %v984_v8 = vpack.c.bf16 %v917_v5, %v917_v5  ;;  %v2138_v9 = vpop.f32.mrb[15].mxu1  ;;  %v2272_v7 = vld [vmem:[%s2695_s3 + $0x28] sm:$0xff]  }
 0x315   : > { %v2273_v9 = vld [vmem:[%s2699_s7 + $0x20] sm:$0xff]  }
 0x316   : > { %v989_v11 = vsel %vm681_vm3, %v984_v8, 0 }
 0x317   : > { %2146 = vmatpush3.bf16.msra.mxu1 %v989_v11 }
 0x318   : > { %2157 = vmatprep.subr.bf16.mxu1 %v2307_v10 }
 0x393   : > { %v667_v12 = vpop.xlane.xlu1 %666 }
 0x394   : > { %v668_v13 = vsub.f32 %v664_v60, %v667_v12  ;;  %v1084_v60 = vsel %vm681_vm3, %v726_v57, 0 }
 0x396   : > { %v669_v14 = vmul.f32 1.442695, %v668_v13 }
 0x398   : > { %2283 = vpow2.f32 %v669_v14  ;;  %v2274_v14 = vld [vmem:[%s2699_s7 + $0x28] sm:$0xff]  }
 0x3a2   : > { %v2284_v15 = vpop.eup %2283 }
 0x3a3   : > { %v671_v16 = vsel %vm616_vm2, %v2284_v15, 0.0 }
 0x3a4   : > { %672 = vadd.xlane.f32.xlu1 %v671_v16 }
 0x431   : > { %v673_v17 = vpop.xlane.xlu1 %672 }
 0x432   : > { %2285 = vrcp.f32 %v673_v17 }
 0x43c   : > { %v2286_v18 = vpop.eup %2285 }
 0x43d   : > { %v675_v19 = vmul.f32 %v2286_v18, %v2284_v15  ;;  %v1968_v15 = vld [vmem:[%s2698_s6 + $0x2] ss:$0 sm:$0xff] }
 0x43f   : > { %v676_v21 = vpack.c.bf16 %v675_v19, %v675_v19 }
 0x441   : > { %2112 = vmatmul.mubr.msk.bf16.vlgmr.msra.gmra.mrb[8].mxu0 %vm616_vm2, %v676_v21 }
 0x442   : > { %2124 = vmatpush3.bf16.msra.mxu0 %v2267_v20  ;;  %2127 = vmatprep.mubr.msk.bf16.mxu0 %vm2308_vm1, %v2307_v10 }
 0x443   : > { %2125 = vmatprep.subr.bf16.mxu0 %v2307_v10 }
 0x446   : > { %2126 = vmatpush3.bf16.msra.mxu0 %v2268_v22 }
 0x447   : > { %2139 = vmatprep.subr.bf16.mxu0 %v2307_v10 }
 0x449   : > { %2128 = vmatmul.mubr.msk.bf16.vlgmr.msra.gmra.mrb[12].mxu0 %vm385_vm0, %v2422_v23 }
 0x44a   : > { %2141 = vmatprep.mubr.msk.bf16.mxu0 %vm2308_vm1, %v2307_v10 }
 0x514   : > { %v719_v24 = vpop.f32.mrb[8].mxu0 }
 0x515   : > { %v2113_v25 = vpop.f32.mrb[9].mxu0  ;;  %v725_v62 = vpack.c.bf16 %v719_v24, %v719_v24 }
 0x516   : > { %v722_v26 = vpop.f32.mrb[10].mxu0 }
 0x517   : > { %v2114_v27 = vpop.f32.mrb[11].mxu0 }
 0x51c   : > { %v851_v29 = vpop.f32.mrb[12].mxu0 }
 0x51d   : > { %v852_v30 = vadd.f32 %v1936_v28, %v851_v29  ;;  %v2129_v31 = vpop.f32.mrb[13].mxu0  ;;  %v1959_v29 = vld [vmem:[%s2696_s4 + $0x2] ss:$0 sm:$0xff] }
 0x51e   : > { %v854_v32 = vpop.f32.mrb[14].mxu0 }
 0x51f   : > { %v923_v33 = vpack.c.bf16 %v852_v30, %v852_v30  ;;  %v2130_v34 = vpop.f32.mrb[15].mxu0 }
 0x521   : > { %v928_v36 = vsel %vm616_vm2, %v923_v33, 0 }
 0x522   : > { %2140 = vmatpush3.bf16.xpose.msra.mxu0 %v928_v36  ;;  %v1977_v36 = vld [vmem:[%s2700_s8 + $0x2] ss:$0 sm:$0xff] }
 0x523   : > { %2151 = vmatprep.subr.bf16.mxu0 %v2307_v10 }
 0x529   : > { %2142 = vmatmul.mubr.msk.bf16.vlgmr.msra.gmra.mrb[16].mxu0 %vm616_vm2, %v922_v38 }
 0x52a   : > { %2153 = vmatprep.mubr.msk.bf16.mxu0 %vm2308_vm1, %v2307_v10  ;;  %2152 = vmatpush3.bf16.msra.mxu0 %v1038_v52 }
 0x52b   : > { %2163 = vmatprep.subr.bf16.mxu0 %v2307_v10 }
 0x5fc   : > { %v964_v39 = vpop.f32.mrb[16].mxu0 }
 0x5fd   : > { %v970_v40 = vmul.f32 0.35355338, %v964_v39  ;;  %v2143_v41 = vpop.f32.mrb[17].mxu0 }
 0x5fe   : > { %v967_v42 = vpop.f32.mrb[18].mxu0 }
 0x5ff   : > { %v2144_v43 = vpop.f32.mrb[19].mxu0  ;;  %v971_v44 = vsel %vm421_vm4, %v970_v40, -inf }
 0x600   : > { %v972_v45 = vsel %vm616_vm2, %v971_v44, -inf }
 0x601   : > { %973 = vmax.xlane.f32.xlu0 %v972_v45 }
 0x68e   : > { %v974_v46 = vpop.xlane.xlu0 %973 }
 0x68f   : > { %v975_v47 = vsub.f32 %v971_v44, %v974_v46 }
 0x691   : > { %v976_v48 = vmul.f32 1.442695, %v975_v47 }
 0x693   : > { %2287 = vpow2.f32 %v976_v48 }
 0x69d   : > { %v2288_v49 = vpop.eup %2287 }
 0x69e   : > { %v978_v50 = vsel %vm616_vm2, %v2288_v49, 0.0 }
 0x69f   : > { %979 = vadd.xlane.f32.xlu1 %v978_v50 }
 0x72c   : > { %v980_v55 = vpop.xlane.xlu1 %979 }
 0x72d   : > { %2289 = vrcp.f32 %v980_v55 }
 0x737   : > { %v2290_v56 = vpop.eup %2289 }
 0x738   : > { %v982_v58 = vmul.f32 %v2290_v56, %v2288_v49 }
 0x73a   : > { %v983_v59 = vpack.c.bf16 %v982_v58, %v982_v58  ;;  %v1983_v58 = vld [vmem:[%s2701_s9 + $0x8] sm:$0xf] }
 0x73c   : > { %2148 = vmatmul.mubr.msk.bf16.vlgmr.msra.gmra.mrb[16].mxu1 %vm616_vm2, %v983_v59  ;;  %v1437_v59 = vsel %vm681_vm3, %v1983_v58, 0 }
 0x73d   : > { %2158 = vmatpush3.bf16.msra.mxu1 %v1084_v60  ;;  %2159 = vmatprep.mubr.msk.bf16.mxu1 %vm2308_vm1, %v2307_v10 }
 0x73e   : > { %2171 = vmatprep.subr.bf16.mxu1 %v2307_v10 }
 0x744   : > { %2160 = vmatmul.mubr.msk.bf16.vlgmr.msra.gmra.mrb[20].mxu1 %vm616_vm2, %v725_v62 }
 0x745   : > { %2172 = vmatpush3.bf16.msra.mxu1 %v2269_v61  ;;  %2175 = vmatprep.mubr.msk.bf16.mxu1 %vm2308_vm1, %v2307_v10 }
 0x746   : > { %2173 = vmatprep.subr.bf16.mxu1 %v2307_v10 }
 0x749   : > { %2174 = vmatpush3.bf16.msra.mxu1 %v2270_v63  ;;  %v2275_v63 = vld [vmem:[%s2695_s3 + $0x30] sm:$0xff]  }
 0x74a   : > { %2187 = vmatprep.subr.bf16.mxu1 %v2307_v10 }
 0x74c   : > { %2176 = vmatmul.mubr.msk.bf16.vlgmr.msra.gmra.mrb[24].mxu1 %vm385_vm0, %v2422_v23 }
 0x74d   : > { %2189 = vmatprep.mubr.msk.bf16.mxu1 %vm2308_vm1, %v2307_v10 }
 0x80f   : > { %v1025_v0 = vpop.f32.mrb[16].mxu1 }
 0x810   : > { %v1031_v3 = vpack.c.bf16 %v1025_v0, %v1025_v0  ;;  %v2149_v4 = vpop.f32.mrb[17].mxu1 }
 0x811   : > { %v1028_v5 = vpop.f32.mrb[18].mxu1  ;;  %v2278_v4 = vld [vmem:[%s2699_s7 + $0x38] sm:$0xff]  }
 0x812   : > { %v2150_v6 = vpop.f32.mrb[19].mxu1  ;;  %2154 = vmatmul.mubr.msk.bf16.vlgmr.msra.gmra.mrb[20].mxu0 %vm616_vm2, %v1031_v3  ;;  %v2277_v3 = vld [vmem:[%s2699_s7 + $0x30] sm:$0xff]  }
 0x813   : > { %2164 = vmatpush3.bf16.msra.mxu0 %v2271_v2  ;;  %2167 = vmatprep.mubr.msk.bf16.mxu0 %vm2308_vm1, %v2307_v10  ;;  %v2276_v2 = vld [vmem:[%s2695_s3 + $0x38] sm:$0xff]   ;;  %v2279_v6 = vld [vmem:[%s2697_s5 + $0x30] sm:$0xff]  }
 0x814   : > { %2165 = vmatprep.subr.bf16.mxu0 %v2307_v10 }
 0x817   : > { %v1120_v8 = vpop.f32.mrb[20].mxu1  ;;  %2166 = vmatpush3.bf16.msra.mxu0 %v2272_v7 }
 0x818   : > { %v2161_v11 = vpop.f32.mrb[21].mxu1  ;;  %2179 = vmatprep.subr.bf16.mxu0 %v2307_v10 }
 0x819   : > { %v1123_v12 = vpop.f32.mrb[22].mxu1 }
 0x81a   : > { %v2162_v13 = vpop.f32.mrb[23].mxu1  ;;  %2168 = vmatmul.mubr.msk.bf16.vlgmr.msra.gmra.mrb[24].mxu0 %vm385_vm0, %v2422_v23  ;;  %v2280_v12 = vld [vmem:[%s2697_s5 + $0x38] sm:$0xff]  }
 0x81b   : > { %2180 = vmatpush3.bf16.msra.mxu0 %v2273_v9  ;;  %2183 = vmatprep.mubr.msk.bf16.mxu0 %vm2308_vm1, %v2307_v10 }
 0x81c   : > { %2181 = vmatprep.subr.bf16.mxu0 %v2307_v10 }
 0x81f   : > { %v1250_v16 = vpop.f32.mrb[24].mxu1  ;;  %2182 = vmatpush3.bf16.msra.mxu0 %v2274_v14 }
 0x820   : > { %v1251_v17 = vadd.f32 %v1968_v15, %v1250_v16  ;;  %v2177_v18 = vpop.f32.mrb[25].mxu1  ;;  %2193 = vmatprep.subr.bf16.mxu0 %v2307_v10 }
 0x821   : > { %v1253_v19 = vpop.f32.mrb[26].mxu1 }
 0x822   : > { %v1322_v20 = vpack.c.bf16 %v1251_v17, %v1251_v17  ;;  %v2178_v21 = vpop.f32.mrb[27].mxu1  ;;  %2184 = vmatmul.mubr.msk.bf16.vlgmr.msra.gmra.mrb[28].mxu0 %vm385_vm0, %v2422_v23  ;;  %v2008_v17 = vld [vmem:[%s2700_s8 + $0x3] ss:$0 sm:$0xff] }
 0x823   : > { %2195 = vmatprep.mubr.msk.bf16.mxu0 %vm2308_vm1, %v2307_v10 }
 0x824   : > { %v1327_v22 = vsel %vm616_vm2, %v1322_v20, 0 }
 0x825   : > { %2188 = vmatpush3.bf16.xpose.msra.mxu1 %v1327_v22 }
 0x826   : > { %2199 = vmatprep.subr.bf16.mxu1 %v2307_v10 }
 0x8e5   : > { %v1074_v24 = vpop.f32.mrb[20].mxu0 }
 0x8e6   : > { %v2588_v25 = vadd.f32 %v1120_v8, %v1074_v24  ;;  %v2155_v26 = vpop.f32.mrb[21].mxu0 }
 0x8e7   : > { %v1077_v27 = vpop.f32.mrb[22].mxu0 }
 0x8e8   : > { %v2156_v28 = vpop.f32.mrb[23].mxu0 }
 0x8ed   : > { %v1185_v30 = vpop.f32.mrb[24].mxu0 }
 0x8ee   : > { %v1186_v31 = vadd.f32 %v1959_v29, %v1185_v30  ;;  %v2169_v32 = vpop.f32.mrb[25].mxu0 }
 0x8ef   : > { %v1188_v33 = vpop.f32.mrb[26].mxu0 }
 0x8f0   : > { %v1321_v34 = vpack.c.bf16 %v1186_v31, %v1186_v31  ;;  %v2170_v35 = vpop.f32.mrb[27].mxu0  ;;  %v1999_v31 = vld [vmem:[%s2698_s6 + $0x3] ss:$0 sm:$0xff] }
 0x8f2   : > { %2190 = vmatmul.mubr.msk.bf16.vlgmr.msra.gmra.mrb[28].mxu1 %vm616_vm2, %v1321_v34 }
 0x8f3   : > { %2201 = vmatprep.mubr.msk.bf16.mxu1 %vm2308_vm1, %v2307_v10  ;;  %2200 = vmatpush3.bf16.msra.mxu1 %v1437_v59 }
 0x8f4   : > { %2213 = vmatprep.subr.bf16.mxu1 %v2307_v10 }
 0x8f5   : > { %v1315_v37 = vpop.f32.mrb[28].mxu0 }
 0x8f6   : > { %v1316_v38 = vadd.f32 %v1977_v36, %v1315_v37  ;;  %v2185_v39 = vpop.f32.mrb[29].mxu0 }
 0x8f7   : > { %v1318_v40 = vpop.f32.mrb[30].mxu0 }
 0x8f8   : > { %v1383_v41 = vpack.c.bf16 %v1316_v38, %v1316_v38  ;;  %v2186_v42 = vpop.f32.mrb[31].mxu0  ;;  %v1990_v38 = vld [vmem:[%s2696_s4 + $0x3] ss:$0 sm:$0xff] }
 0x8fa   : > { %v1388_v43 = vsel %vm681_vm3, %v1383_v41, 0 }
 0x8fb   : > { %2194 = vmatpush3.bf16.msra.mxu0 %v1388_v43 }
 0x8fc   : > { %2205 = vmatprep.subr.bf16.mxu0 %v2307_v10 }
 0x9c5   : > { %v1363_v44 = vpop.f32.mrb[28].mxu1 }
 0x9c6   : > { %v1369_v45 = vmul.f32 0.35355338, %v1363_v44  ;;  %v2191_v46 = vpop.f32.mrb[29].mxu1 }
 0x9c7   : > { %v1366_v47 = vpop.f32.mrb[30].mxu1 }
 0x9c8   : > { %v2192_v48 = vpop.f32.mrb[31].mxu1  ;;  %v1370_v49 = vsel %vm421_vm4, %v1369_v45, -inf }
 0x9c9   : > { %v1371_v50 = vsel %vm616_vm2, %v1370_v49, -inf }
 0x9ca   : > { %1372 = vmax.xlane.f32.xlu0 %v1371_v50 }
 0xa57   : > { %v1373_v51 = vpop.xlane.xlu0 %1372 }
 0xa58   : > { %v1374_v52 = vsub.f32 %v1370_v49, %v1373_v51 }
 0xa5a   : > { %v1375_v55 = vmul.f32 1.442695, %v1374_v52 }
 0xa5c   : > { %2291 = vpow2.f32 %v1375_v55 }
 0xa66   : > { %v2292_v56 = vpop.eup %2291 }
 0xa67   : > { %v1377_v57 = vsel %vm616_vm2, %v2292_v56, 0.0 }
 0xa68   : > { %1378 = vadd.xlane.f32.xlu1 %v1377_v57 }
 0xaf5   : > { %v1379_v60 = vpop.xlane.xlu1 %1378 }
 0xaf6   : > { %2293 = vrcp.f32 %v1379_v60 }
 0xb00   : > { %v2294_v61 = vpop.eup %2293 }
 0xb01   : > { %v1381_v62 = vmul.f32 %v2294_v61, %v2292_v56 }
 0xb03   : > { %v1382_v0 = vpack.c.bf16 %v1381_v62, %v1381_v62 }
 0xb05   : > { %2196 = vmatmul.mubr.msk.bf16.vlgmr.msra.gmra.mrb[32].mxu0 %vm616_vm2, %v1382_v0 }
 0xb06   : > { %2206 = vmatpush3.bf16.msra.mxu0 %v2275_v63  ;;  %2209 = vmatprep.mubr.msk.bf16.mxu0 %vm2308_vm1, %v2307_v10 }
 0xb07   : > { %2207 = vmatprep.subr.bf16.mxu0 %v2307_v10 }
 0xb0a   : > { %2208 = vmatpush3.bf16.msra.mxu0 %v2276_v2 }
 0xb0b   : > { %2221 = vmatprep.subr.bf16.mxu0 %v2307_v10 }
 0xb0d   : > { %2210 = vmatmul.mubr.msk.bf16.vlgmr.msra.gmra.mrb[36].mxu0 %vm385_vm0, %v2422_v23 }
 0xb0e   : > { %2222 = vmatpush3.bf16.msra.mxu0 %v2277_v3  ;;  %2225 = vmatprep.mubr.msk.bf16.mxu0 %vm2308_vm1, %v2307_v10  ;;  %v2016_v3 = vld [vmem:[%s2702_s10] ss:$0 sm:$0xff] }
 0xb0f   : > { %2223 = vmatprep.subr.bf16.mxu0 %v2307_v10 }
 0xb12   : > { %2224 = vmatpush3.bf16.msra.mxu0 %v2278_v4 }
 0xb13   : > { %2235 = vmatprep.subr.bf16.mxu0 %v2307_v10 }
 0xb15   : > { %2226 = vmatmul.mubr.msk.bf16.vlgmr.msra.gmra.mrb[40].mxu0 %vm385_vm0, %v2422_v23 }
 0xb16   : > { %2237 = vmatprep.mubr.msk.bf16.mxu0 %vm2308_vm1, %v2307_v10 }
 0xbd8   : > { %v1424_v5 = vpop.f32.mrb[32].mxu0 }
 0xbd9   : > { %v1430_v7 = vpack.c.bf16 %v1424_v5, %v1424_v5  ;;  %v2197_v8 = vpop.f32.mrb[33].mxu0 }
 0xbda   : > { %v1427_v9 = vpop.f32.mrb[34].mxu0 }
 0xbdb   : > { %v2198_v11 = vpop.f32.mrb[35].mxu0  ;;  %2202 = vmatmul.mubr.msk.bf16.vlgmr.msra.gmra.mrb[32].mxu1 %vm616_vm2, %v1430_v7 }
 0xbdc   : > { %2214 = vmatpush3.bf16.msra.mxu1 %v2279_v6  ;;  %2217 = vmatprep.mubr.msk.bf16.mxu1 %vm2308_vm1, %v2307_v10 }
 0xbdd   : > { %2215 = vmatprep.subr.bf16.mxu1 %v2307_v10 }
 0xbe0   : > { %v1539_v13 = vpop.f32.mrb[36].mxu0  ;;  %2216 = vmatpush3.bf16.msra.mxu1 %v2280_v12 }
 0xbe1   : > { %v2211_v14 = vpop.f32.mrb[37].mxu0  ;;  %2229 = vmatprep.subr.bf16.mxu1 %v2307_v10 }
 0xbe2   : > { %v1542_v15 = vpop.f32.mrb[38].mxu0 }
 0xbe3   : > { %v2212_v16 = vpop.f32.mrb[39].mxu0  ;;  %2218 = vmatmul.mubr.msk.bf16.vlgmr.msra.gmra.mrb[36].mxu1 %vm385_vm0, %v2422_v23 }
 0xbe4   : > { %2231 = vmatprep.mubr.msk.bf16.mxu1 %vm2308_vm1, %v2307_v10 }
 0xbe8   : > { %v1669_v18 = vpop.f32.mrb[40].mxu0 }
 0xbe9   : > { %v1670_v19 = vadd.f32 %v2008_v17, %v1669_v18  ;;  %v2227_v20 = vpop.f32.mrb[41].mxu0 }
 0xbea   : > { %v1672_v21 = vpop.f32.mrb[42].mxu0 }
 0xbeb   : > { %v1737_v22 = vpack.c.bf16 %v1670_v19, %v1670_v19  ;;  %v2228_v24 = vpop.f32.mrb[43].mxu0 }
 0xbed   : > { %v1742_v26 = vsel %vm681_vm3, %v1737_v22, 0 }
 0xbee   : > { %2236 = vmatpush3.bf16.msra.mxu0 %v1742_v26 }
 0xcae   : > { %v1473_v27 = vpop.f32.mrb[32].mxu1 }
 0xcaf   : > { %v1479_v28 = vadd.f32 %v1473_v27, %v2588_v25  ;;  %v2203_v23 = vpop.f32.mrb[33].mxu1  ;;  %v1540_v25 = vadd.f32 %v1990_v38, %v1539_v13 }
 0xcb0   : > { %v1476_v29 = vpop.f32.mrb[34].mxu1 }
 0xcb1   : > { %v2204_v30 = vpop.f32.mrb[35].mxu1  ;;  %v1675_v40 = vpack.c.bf16 %v1540_v25, %v1540_v25 }
 0xcb6   : > { %v1604_v32 = vpop.f32.mrb[36].mxu1 }
 0xcb7   : > { %v1605_v33 = vadd.f32 %v1999_v31, %v1604_v32  ;;  %v2219_v34 = vpop.f32.mrb[37].mxu1 }
 0xcb8   : > { %v1607_v35 = vpop.f32.mrb[38].mxu1 }
 0xcb9   : > { %v1676_v36 = vpack.c.bf16 %v1605_v33, %v1605_v33  ;;  %v2220_v37 = vpop.f32.mrb[39].mxu1 }
 0xcbb   : > { %v1681_v39 = vsel %vm616_vm2, %v1676_v36, 0 }
 0xcbc   : > { %2230 = vmatpush3.bf16.xpose.msra.mxu1 %v1681_v39 }
 0xcbd   : > { %2241 = vmatprep.subr.bf16.mxu1 %v2307_v10 }
 0xcc3   : > { %2232 = vmatmul.mubr.msk.bf16.vlgmr.msra.gmra.mrb[40].mxu1 %vm616_vm2, %v1675_v40 }
 0xcc4   : > { %2243 = vmatprep.mubr.msk.bf16.mxu1 %vm2308_vm1, %v2307_v10  ;;  %v2014_v10 = vld [vmem:[%s2701_s9 + $0xc] sm:$0xf] }
 0xcc5   : > { %v1791_v55 = vsel %vm681_vm3, %v2014_v10, 0 }
 0xcc6   : > { %2242 = vmatpush3.bf16.msra.mxu1 %v1791_v55 }
 0xd96   : > { %v1717_v41 = vpop.f32.mrb[40].mxu1 }
 0xd97   : > { %v1723_v42 = vmul.f32 0.35355338, %v1717_v41  ;;  %v2233_v43 = vpop.f32.mrb[41].mxu1 }
 0xd98   : > { %v1720_v44 = vpop.f32.mrb[42].mxu1 }
 0xd99   : > { %v2234_v45 = vpop.f32.mrb[43].mxu1  ;;  %v1724_v46 = vsel %vm421_vm4, %v1723_v42, -inf }
 0xd9a   : > { %v1725_v47 = vsel %vm616_vm2, %v1724_v46, -inf }
 0xd9b   : > { %1726 = vmax.xlane.f32.xlu0 %v1725_v47 }
 0xe28   : > { %v1727_v48 = vpop.xlane.xlu0 %1726 }
 0xe29   : > { %v1728_v49 = vsub.f32 %v1724_v46, %v1727_v48 }
 0xe2b   : > { %v1729_v50 = vmul.f32 1.442695, %v1728_v49 }
 0xe2d   : > { %2295 = vpow2.f32 %v1729_v50 }
 0xe37   : > { %v2296_v51 = vpop.eup %2295 }
 0xe38   : > { %v1731_v52 = vsel %vm616_vm2, %v2296_v51, 0.0 }
 0xe39   : > { %1732 = vadd.xlane.f32.xlu1 %v1731_v52 }
 0xec6   : > { %v1733_v53 = vpop.xlane.xlu1 %1732 }
 0xec7   : > { %2297 = vrcp.f32 %v1733_v53 }
 0xed1   : > { %v2298_v54 = vpop.eup %2297 }
 0xed2   : > { %v1735_v56 = vmul.f32 %v2298_v54, %v2296_v51 }
 0xed4   : > { %v1736_v57 = vpack.c.bf16 %v1735_v56, %v1735_v56 }
 0xed6   : > { %2238 = vmatmul.mubr.msk.bf16.vlgmr.msra.gmra.mrb[44].mxu0 %vm616_vm2, %v1736_v57 }
 0xfa9   : > { %v1778_v58 = vpop.f32.mrb[44].mxu0 }
 0xfaa   : > { %v1784_v59 = vpack.c.bf16 %v1778_v58, %v1778_v58  ;;  %v2239_v60 = vpop.f32.mrb[45].mxu0 }
 0xfab   : > { %v1781_v61 = vpop.f32.mrb[46].mxu0 }
 0xfac   : > { %v2240_v62 = vpop.f32.mrb[47].mxu0  ;;  %2244 = vmatmul.mubr.msk.bf16.vlgmr.msra.gmra.mrb[44].mxu1 %vm616_vm2, %v1784_v59 }
0x107f   : > { %v1827_v63 = vpop.f32.mrb[44].mxu1 }
0x1080   : > { %v1833_v0 = vadd.f32 %v1827_v63, %v1479_v28  ;;  %v2245_v2 = vpop.f32.mrb[45].mxu1 }
0x1081   : > { %v1830_v4 = vpop.f32.mrb[46].mxu1 }
0x1082   : > { %v1834_v5 = vadd.f32 %v1833_v0, %v2385_v1  ;;  %v2246_v6 = vpop.f32.mrb[47].mxu1 }
0x1084   : > { %v1842_v7 = vadd.f32 %v2016_v3, %v1834_v5 }
0x1086   : > { %v1843_v8 = vpack.c.bf16 %v1842_v7, %v1842_v7 }
0x1088   : > { %1845 = vst.msk [vmem:[%s381_s12] sm:$0xf] %vm1844_vm5, %v1843_v8 }
0x1089 PF: > { %s21_s17 = sadd.s32 1, %s2305_s17  }
0x108a   : > { %p18_p4 = scmp.ge.s32.totalorder %s21_s17, 4  }
0x108c   :  { %20 = sbr.rel (!%p18_p4) target bundleno = 1 (0x1), region = 115 }

</bundles_post_ra>
